<compile_context>
chip_gen: v7x
topology: tpu7x:2x2x1
jax: 0.10.0
libtpu: 0.0.40
codegen_flags: <defaults>
</compile_context>

<pallas_src>
import functools

import jax
import jax.numpy as jnp
from jax import lax
from jax.experimental import pallas as pl
from jax.experimental.pallas import tpu as pltpu


def _round_up(x, m):
    return ((x + m - 1) // m) * m


def _tpu_info():
    """(num_tensorcores_per_chip, vmem_capacity_bytes) with safe fallbacks."""
    vmem = 128 << 20
    cores = 1
    kind = ""
    try:
        kind = jax.devices()[0].device_kind.lower()
    except Exception:
        pass
    try:
        info = pltpu.get_tpu_info()
        vmem = int(getattr(info, "vmem_capacity_bytes", vmem))
        for name in ("num_cores", "num_tensorcores", "tensorcore_count",
                     "cores_per_chip"):
            val = getattr(info, name, None)
            if isinstance(val, int) and val > 0:
                cores = val
                break
    except Exception:
        pass
    # Generation heuristics as a backstop for missing fields.
    if "7" in kind:                      # v7x: 64 MiB VMEM per TensorCore, 2 TCs
        vmem = min(vmem, 64 << 20)
        cores = max(cores, 2)
    if cores == 1 and any(t in kind for t in ("v4", "v5p")):
        cores = 2                        # megacore chips
    return cores, vmem


def gru_fc_kernel(x_ref, h0_ref, wih_ref, whh_rz_ref, whh_n_ref, gbias_ref,
                  bhn_ref, wfc_ref, bfc_ref, y_ref, hn_ref,
                  h_carry, gx_scr, h_scr,
                  *, seq_len, time_block, mask_tail, unroll, small_input):
    """One (batch-block, time-chunk) grid step of the GRU + per-step Linear.

    x_ref      : (Tc, BB, I)      time-chunk of the input, time-major
    h0_ref     : (BB, Hp)         initial hidden state for this batch block
    wih_ref    : (I, 3*Hp)        input->gates weights, gate slabs [r | z | n]
    whh_rz_ref : (Hp, 2*Hp)       hidden->(r,z) weights
    whh_n_ref  : (Hp, Hp)         hidden->n weights
    gbias_ref  : (1, 3*Hp)        folded gate bias: [b_ir+b_hr | b_iz+b_hz | b_in]
    bhn_ref    : (1, Hp)          b_hn (separate because of the r * (.) term)
    wfc_ref    : (Hp, Op)         fc weights (lane-dense, Op = round_up(O, 128))
    bfc_ref    : (1, Op)          fc bias
    y_ref      : (Tc, BB, Op)     per-timestep fc output for this chunk
    hn_ref     : (BB, Hp)         final hidden state (written on the last chunk)
    h_carry    : VMEM (BB, Hp)        recurrent state carried across time chunks
    gx_scr     : VMEM (Tc, BB, 3*Hp)  precomputed input-projection gates
    h_scr      : VMEM (Tc, BB, Hp)    chunk hidden states (for the batched fc)
    """
    tb = pl.program_id(1)
    Tc, BB, I = x_ref.shape
    Hp = h0_ref.shape[-1]
    Op = y_ref.shape[-1]

    @pl.when(tb == 0)
    def _init_carry():
        h_carry[...] = h0_ref[...]

    # (1) Input projection for the whole chunk, off the serial chain.
    #     For tiny I a K=I matmul wastes >99% of the MXU and makes a degenerate
    #     1-lane x layout -> use a VPU broadcast FMA instead (static choice).
    gbias = gbias_ref[...].reshape(1, 1, 3 * Hp)
    if small_input:
        x = x_ref[...]                                   # (Tc, BB, I)
        w = wih_ref[...]                                 # (I, 3*Hp)
        gx = x[:, :, 0:1] * w[0:1, :].reshape(1, 1, 3 * Hp)
        for i in range(1, I):                            # static unroll, I tiny
            gx = gx + x[:, :, i:i + 1] * w[i:i + 1, :].reshape(1, 1, 3 * Hp)
        gx_scr[...] = gx + gbias
    else:
        x_flat = x_ref[...].reshape(Tc * BB, I)
        gx = jnp.dot(x_flat, wih_ref[...], preferred_element_type=jnp.float32)
        gx_scr[...] = gx.reshape(Tc, BB, 3 * Hp) + gbias

    # Hoisted loop invariants (JAX does not CSE broadcasts inside loop bodies).
    w_rz = whh_rz_ref[...]
    w_n = whh_n_ref[...]
    b_hn = jnp.broadcast_to(bhn_ref[...], (BB, Hp))

    t0 = tb * time_block

    # (2) Serial recurrence.  The hidden matmul is split so the r/z sigmoids
    #     (EUP) can overlap the n-gate vmatmul (MXU); only this loop is serial.
    def step(t, h):
        g = gx_scr[t]                                                   # (BB, 3Hp)
        gh_rz = jnp.dot(h, w_rz, preferred_element_type=jnp.float32)    # (BB, 2Hp)
        r = jax.nn.sigmoid(g[:, :Hp] + gh_rz[:, :Hp])
        z = jax.nn.sigmoid(g[:, Hp:2 * Hp] + gh_rz[:, Hp:])
        gh_n = jnp.dot(h, w_n, preferred_element_type=jnp.float32)      # (BB, Hp)
        n = jnp.tanh(g[:, 2 * Hp:] + r * (gh_n + b_hn))
        h_new = (1.0 - z) * n + z * h
        if mask_tail:  # static: only when T was padded up to a chunk multiple
            h_new = jnp.where(t0 + t < seq_len, h_new, h)
        h_scr[t] = h_new
        return h_new

    h_last = lax.fori_loop(0, Tc, step, h_carry[...], unroll=unroll)
    h_carry[...] = h_last

    @pl.when(tb == pl.num_programs(1) - 1)
    def _write_hn():
        hn_ref[...] = h_last

    # (3) Per-timestep Linear, batched over the whole chunk: one lane-dense
    #     matmul and dense (unmasked) stores into the 128-wide padded output.
    h_all = h_scr[...].reshape(Tc * BB, Hp)
    y = jnp.dot(h_all, wfc_ref[...], preferred_element_type=jnp.float32) + bfc_ref[...]
    y_ref[...] = y.reshape(Tc, BB, Op)


def rnn_model_forward(x, h_state, params, *, time_block=256):
    """Equivalent of RNNModel.forward(input, h_state) for cell='GRU', num_layers=1."""
    B, T, I = x.shape
    H = params["w_hh"].shape[1]     # torch weight_hh_l0 is (3H, H)
    O = params["w_fc"].shape[0]     # torch fc.weight is (O, H)

    num_cores, vmem_cap = _tpu_info()

    # --- vreg/MXU-friendly padded sizes -------------------------------------
    Hp = _round_up(H, 128)          # lanes
    Op = _round_up(O, 128)          # lane-dense output stores
    Bp = _round_up(B, 8)            # sublanes

    # Only split the batch when a second TensorCore can actually take the other
    # half; on single-TC chips (v5e/v6e) a split just serializes two recurrences.
    if num_cores >= 2 and Bp >= 16:
        Bp = _round_up(Bp, 16)
        BB = Bp // 2
        nb = 2
    else:
        BB = Bp
        nb = 1

    # --- VMEM-adaptive time-chunk length ------------------------------------
    # Per-timestep VMEM bytes: x (double-buffered) + gx_scr + h_scr + y (dbuf).
    per_t = 4 * BB * (2 * I + 4 * Hp + 2 * Op)
    # Fixed bytes: single-buffered weights/biases + h0/hn/h_carry (+ slack).
    fixed = 4 * (I * 3 * Hp + Hp * 3 * Hp + 3 * Hp + Hp + Hp * Op + Op
                 + 4 * BB * Hp)
    budget = int(0.70 * vmem_cap)
    Tc = max(1, min(T, time_block))
    while Tc > 16 and fixed + per_t * Tc > budget:
        Tc = (Tc + 1) // 2
    Tp = _round_up(T, Tc)
    nt = Tp // Tc
    mask_tail = Tp != T

    # vreg-pressure-aware unroll of the recurrence (live set of g/gh/r/z/n/h).
    unroll = max(1, min(8, (8 * 1024) // max(1, BB * Hp), Tc))
    small_input = I < 64

    f32 = jnp.float32
    w_ih_t = params["w_ih"].T.astype(f32)      # (I, 3H), gate order r|z|n
    w_hh_t = params["w_hh"].T.astype(f32)      # (H, 3H)
    b_ih = params["b_ih"].astype(f32)
    b_hh = params["b_hh"].astype(f32)

    def pad_gate_cols(w):           # (..., 3H) -> (..., 3Hp), Hp-wide gate slabs
        pad = [(0, 0)] * (w.ndim - 1) + [(0, Hp - H)]
        return jnp.concatenate(
            [jnp.pad(w[..., :H], pad),
             jnp.pad(w[..., H:2 * H], pad),
             jnp.pad(w[..., 2 * H:], pad)], axis=-1)

    w_ih_p = pad_gate_cols(w_ih_t)                                     # (I, 3Hp)
    w_hh_p = pad_gate_cols(jnp.pad(w_hh_t, ((0, Hp - H), (0, 0))))     # (Hp, 3Hp)
    w_hh_rz_p = w_hh_p[:, :2 * Hp]                                     # (Hp, 2Hp)
    w_hh_n_p = w_hh_p[:, 2 * Hp:]                                      # (Hp, Hp)
    # Folded gate bias: b_hh for r,z is absorbed into the precomputed gx; b_hn
    # must stay separate because of the r * (W_hn h + b_hn) term.
    gbias = jnp.concatenate(
        [jnp.pad(b_ih[:H] + b_hh[:H], (0, Hp - H)),
         jnp.pad(b_ih[H:2 * H] + b_hh[H:2 * H], (0, Hp - H)),
         jnp.pad(b_ih[2 * H:], (0, Hp - H))])[None, :]                 # (1, 3Hp)
    b_hn = jnp.pad(b_hh[2 * H:], (0, Hp - H))[None, :]                 # (1, Hp)

    w_fc_p = jnp.pad(params["w_fc"].T.astype(f32),
                     ((0, Hp - H), (0, Op - O)))                       # (Hp, Op)
    b_fc_p = jnp.pad(params["b_fc"].astype(f32), (0, Op - O))[None, :]  # (1, Op)

    # Time-major, padded x / h0 (x transpose is B*T*I elements -- negligible).
    x_p = jnp.pad(jnp.transpose(x, (1, 0, 2)).astype(f32),
                  ((0, Tp - T), (0, Bp - B), (0, 0)))                  # (Tp, Bp, I)
    h0_p = jnp.pad(h_state[0].astype(f32),
                   ((0, Bp - B), (0, Hp - H)))                         # (Bp, Hp)

    # VMEM limit derived from the real device capacity (64 MiB/TC on v7x,
    # 128 MiB on v5e/v6e), with headroom for Mosaic internal scratch.
    est = fixed + per_t * Tc
    vmem_limit = min(max(int(est * 1.5) + (8 << 20), 16 << 20),
                     int(0.9 * vmem_cap))

    # Constant blocks: single VMEM buffer (they never change across the grid).
    def _const_spec(shape):
        idx = lambda bi, tb, _n=len(shape): (0,) * _n
        try:
            return pl.BlockSpec(shape, idx, pipeline_mode=pl.Buffered(1))
        except TypeError:  # older BlockSpec without pipeline_mode
            return pl.BlockSpec(shape, idx)

    kernel = functools.partial(gru_fc_kernel, seq_len=T, time_block=Tc,
                               mask_tail=mask_tail, unroll=unroll,
                               small_input=small_input)

    y_p, hn_p = pl.pallas_call(
        kernel,
        out_shape=(jax.ShapeDtypeStruct((Tp, Bp, Op), f32),
                   jax.ShapeDtypeStruct((Bp, Hp), f32)),
        grid=(nb, nt),
        in_specs=[
            pl.BlockSpec((Tc, BB, I), lambda bi, tb: (tb, bi, 0)),     # x chunk
            pl.BlockSpec((BB, Hp), lambda bi, tb: (bi, 0)),            # h0
            _const_spec((I, 3 * Hp)),                                  # w_ih
            _const_spec((Hp, 2 * Hp)),                                 # w_hh (r,z)
            _const_spec((Hp, Hp)),                                     # w_hh (n)
            _const_spec((1, 3 * Hp)),                                  # folded gate bias
            _const_spec((1, Hp)),                                      # b_hn
            _const_spec((Hp, Op)),                                     # w_fc
            _const_spec((1, Op)),                                      # b_fc
        ],
        out_specs=(
            pl.BlockSpec((Tc, BB, Op), lambda bi, tb: (tb, bi, 0)),    # y chunk
            pl.BlockSpec((BB, Hp), lambda bi, tb: (bi, 0)),            # h_n
        ),
        scratch_shapes=[
            pltpu.VMEM((BB, Hp), f32),            # h carried across time chunks
            pltpu.VMEM((Tc, BB, 3 * Hp), f32),    # precomputed input-projection gates
            pltpu.VMEM((Tc, BB, Hp), f32),        # chunk hidden states (batched fc)
        ],
        compiler_params=pltpu.CompilerParams(
            dimension_semantics=("parallel", "arbitrary"),
            vmem_limit_bytes=vmem_limit),
    )(x_p, h0_p, w_ih_p, w_hh_rz_p, w_hh_n_p, gbias, b_hn, w_fc_p, b_fc_p)

    # Slice+transpose touches only T*B*O (<1% of the kernel's padded Op=128
    # output writes since O << 128), so it stays in the wrapper rather than
    # risking an in-kernel cross-sublane relayout of the whole chunk.
    outputs = jnp.transpose(y_p[:T, :B, :O], (1, 0, 2))   # (B, T, O)
    h_state_n = hn_p[:B, :H][None]                        # (1, B, H)
    return outputs, h_state_n
    # TODO(synk): num_layers > 1 (stacked GRU) and the RNN/LSTM cell options are not
    # implemented; the module is exercised with cell='GRU', num_layers=1.


def reference_forward(x, h_state, params):
    """Pure-JAX reference mirroring torch.nn.GRU + per-step Linear."""
    B, T, I = x.shape
    H = params["w_hh"].shape[1]
    h = h_state[0]
    ys = []
    for t in range(T):
        x_t = x[:, t, :]
        gx = x_t @ params["w_ih"].T + params["b_ih"]
        gh = h @ params["w_hh"].T + params["b_hh"]
        r = jax.nn.sigmoid(gx[:, :H] + gh[:, :H])
        z = jax.nn.sigmoid(gx[:, H:2 * H] + gh[:, H:2 * H])
        n = jnp.tanh(gx[:, 2 * H:] + r * gh[:, 2 * H:])
        h = (1.0 - z) * n + z * h
        ys.append(h @ params["w_fc"].T + params["b_fc"])
    return jnp.stack(ys, axis=1), h[None]


def init_params(key, input_dim, hidden_size, output_dim):
    """Deterministic init mimicking PyTorch's U(-1/sqrt(H), 1/sqrt(H))."""
    ks = jax.random.split(key, 6)
    bound = 1.0 / jnp.sqrt(jnp.float32(hidden_size))
    u = lambda k, shape: jax.random.uniform(k, shape, jnp.float32, -bound, bound)
    return {
        "w_ih": u(ks[0], (3 * hidden_size, input_dim)),    # weight_ih_l0
        "w_hh": u(ks[1], (3 * hidden_size, hidden_size)),  # weight_hh_l0
        "b_ih": u(ks[2], (3 * hidden_size,)),              # bias_ih_l0
        "b_hh": u(ks[3], (3 * hidden_size,)),              # bias_hh_l0
        "w_fc": u(ks[4], (output_dim, hidden_size)),       # fc.weight
        "b_fc": u(ks[5], (output_dim,)),                   # fc.bias
    }


if __name__ == "__main__":
    key = jax.random.PRNGKey(0)
    k_param, k_x = jax.random.split(key)

    batch, seq_len, input_dim, hidden_size, output_dim = 2, 8, 1, 32, 1

    params = init_params(k_param, input_dim, hidden_size, output_dim)
    x = jax.random.normal(k_x, (batch, seq_len, input_dim), jnp.float32)
    # RNNModel.initHidden: zeros of shape (num_layers, batch, hidden)
    h0 = jnp.zeros((1, batch, hidden_size), jnp.float32)

    fwd = jax.jit(functools.partial(rnn_model_forward, params=params))
    outputs, h_n = fwd(x, h0)
    jax.block_until_ready(outputs)
    jax.block_until_ready(h_n)

    ref_out, ref_hn = reference_forward(x, h0, params)
    assert outputs.shape == (batch, seq_len, output_dim)
    assert h_n.shape == (1, batch, hidden_size)
    assert jnp.allclose(outputs, ref_out, atol=1e-4, rtol=1e-4), \
        float(jnp.max(jnp.abs(outputs - ref_out)))
    assert jnp.allclose(h_n, ref_hn, atol=1e-4, rtol=1e-4), \
        float(jnp.max(jnp.abs(h_n - ref_hn)))

    print("KERNEL_OK")
</pallas_src>

<mosaic_0001>
module attributes {stable_mosaic.version = 11 : i64} {
  func.func @gru_fc_kernel(%arg0: i32, %arg1: i32, %arg2: memref<8x8x1xf32, #tpu.memory_space<vmem>>, %arg3: memref<8x128xf32, #tpu.memory_space<vmem>>, %arg4: memref<1x384xf32, #tpu.memory_space<vmem>>, %arg5: memref<128x256xf32, #tpu.memory_space<vmem>>, %arg6: memref<128x128xf32, #tpu.memory_space<vmem>>, %arg7: memref<1x384xf32, #tpu.memory_space<vmem>>, %arg8: memref<1x128xf32, #tpu.memory_space<vmem>>, %arg9: memref<128x128xf32, #tpu.memory_space<vmem>>, %arg10: memref<1x128xf32, #tpu.memory_space<vmem>>, %arg11: memref<8x8x128xf32, #tpu.memory_space<vmem>>, %arg12: memref<8x128xf32, #tpu.memory_space<vmem>>, %arg13: memref<8x128xf32, #tpu.memory_space<vmem>>, %arg14: memref<8x8x384xf32, #tpu.memory_space<vmem>>, %arg15: memref<8x8x128xf32, #tpu.memory_space<vmem>>) attributes {dimension_semantics = [#tpu.dimension_semantics<parallel>, #tpu.dimension_semantics<arbitrary>], iteration_bounds = array<i64: 1, 1>, scalar_prefetch = 0 : i64, scratch_operands = 3 : i64, tpu.core_type = #tpu.core_type<tc>, window_params = [{transform_indices = @transform_0, window_bounds = array<i64: 8, 8, 1>}, {transform_indices = @transform_1, window_bounds = array<i64: 8, 128>}, {pipeline_mode = #tpu.pipeline_mode<synchronous>, transform_indices = @transform_2, window_bounds = array<i64: 1, 384>}, {pipeline_mode = #tpu.pipeline_mode<synchronous>, transform_indices = @transform_3, window_bounds = array<i64: 128, 256>}, {pipeline_mode = #tpu.pipeline_mode<synchronous>, transform_indices = @transform_4, window_bounds = array<i64: 128, 128>}, {pipeline_mode = #tpu.pipeline_mode<synchronous>, transform_indices = @transform_5, window_bounds = array<i64: 1, 384>}, {pipeline_mode = #tpu.pipeline_mode<synchronous>, transform_indices = @transform_6, window_bounds = array<i64: 1, 128>}, {pipeline_mode = #tpu.pipeline_mode<synchronous>, transform_indices = @transform_7, window_bounds = array<i64: 128, 128>}, {pipeline_mode = #tpu.pipeline_mode<synchronous>, transform_indices = @transform_8, window_bounds = array<i64: 1, 128>}, {transform_indices = @transform_9, window_bounds = array<i64: 8, 8, 128>}, {transform_indices = @transform_10, window_bounds = array<i64: 8, 128>}]} {
    %c0_i32 = arith.constant 0 : i32
    %0 = arith.cmpi eq, %arg1, %c0_i32 : i32
    %1 = arith.extui %0 : i1 to i32
    %c0_i32_0 = arith.constant 0 : i32
    %2 = arith.cmpi ne, %1, %c0_i32_0 : i32
    scf.if %2 {
      %c0_105 = arith.constant 0 : index
      %c0_106 = arith.constant 0 : index
      %313 = vector.load %arg3[%c0_105, %c0_106] : memref<8x128xf32, #tpu.memory_space<vmem>>, vector<8x128xf32>
      %c0_107 = arith.constant 0 : index
      %c0_108 = arith.constant 0 : index
      %314 = vector.load %arg13[%c0_107, %c0_108] : memref<8x128xf32, #tpu.memory_space<vmem>>, vector<8x128xf32>
      tpu.vector_store %arg13[%c0_107, %c0_108], %313 {strides = array<i32>} : memref<8x128xf32, #tpu.memory_space<vmem>>, vector<8x128xf32>,
    } else {
    }
    %c0 = arith.constant 0 : index
    %c0_1 = arith.constant 0 : index
    %3 = vector.load %arg7[%c0, %c0_1] : memref<1x384xf32, #tpu.memory_space<vmem>>, vector<1x384xf32>
    %4 = vector.shape_cast %3 : vector<1x384xf32> to vector<1x1x384xf32>
    %c0_2 = arith.constant 0 : index
    %c0_3 = arith.constant 0 : index
    %c0_4 = arith.constant 0 : index
    %5 = vector.load %arg2[%c0_2, %c0_3, %c0_4] : memref<8x8x1xf32, #tpu.memory_space<vmem>>, vector<8x8x1xf32>
    %c0_5 = arith.constant 0 : index
    %c0_6 = arith.constant 0 : index
    %6 = vector.load %arg4[%c0_5, %c0_6] : memref<1x384xf32, #tpu.memory_space<vmem>>, vector<1x384xf32>
    %7 = vector.shape_cast %6 : vector<1x384xf32> to vector<1x1x384xf32>
    %8 = vector.broadcast %5 : vector<8x8x1xf32> to vector<8x8x384xf32>
    %9 = vector.broadcast %7 : vector<1x1x384xf32> to vector<8x8x384xf32>
    %10 = arith.mulf %8, %9 : vector<8x8x384xf32>
    %11 = vector.broadcast %4 : vector<1x1x384xf32> to vector<8x8x384xf32>
    %12 = arith.addf %10, %11 : vector<8x8x384xf32>
    %c0_7 = arith.constant 0 : index
    %c0_8 = arith.constant 0 : index
    %c0_9 = arith.constant 0 : index
    %13 = vector.load %arg14[%c0_7, %c0_8, %c0_9] : memref<8x8x384xf32, #tpu.memory_space<vmem>>, vector<8x8x384xf32>
    tpu.vector_store %arg14[%c0_7, %c0_8, %c0_9], %12 {strides = array<i32>} : memref<8x8x384xf32, #tpu.memory_space<vmem>>, vector<8x8x384xf32>,
    %c0_10 = arith.constant 0 : index
    %c0_11 = arith.constant 0 : index
    %14 = vector.load %arg5[%c0_10, %c0_11] : memref<128x256xf32, #tpu.memory_space<vmem>>, vector<128x256xf32>
    %c0_12 = arith.constant 0 : index
    %c0_13 = arith.constant 0 : index
    %15 = vector.load %arg6[%c0_12, %c0_13] : memref<128x128xf32, #tpu.memory_space<vmem>>, vector<128x128xf32>
    %c0_14 = arith.constant 0 : index
    %c0_15 = arith.constant 0 : index
    %16 = vector.load %arg8[%c0_14, %c0_15] : memref<1x128xf32, #tpu.memory_space<vmem>>, vector<1x128xf32>
    %17 = vector.shape_cast %16 : vector<1x128xf32> to vector<1x128xf32>
    %18 = vector.broadcast %17 : vector<1x128xf32> to vector<8x128xf32>
    %c0_16 = arith.constant 0 : index
    %c0_17 = arith.constant 0 : index
    %19 = vector.load %arg13[%c0_16, %c0_17] : memref<8x128xf32, #tpu.memory_space<vmem>>, vector<8x128xf32>
    %c0_i32_18 = arith.constant 0 : i32
    %20 = arith.index_cast %c0_i32_18 : i32 to index
    %c0_19 = arith.constant 0 : index
    %c0_20 = arith.constant 0 : index
    %21 = vector.load %arg14[%20, %c0_19, %c0_20] : memref<8x8x384xf32, #tpu.memory_space<vmem>>, vector<1x8x384xf32>
    %22 = vector.shape_cast %21 : vector<1x8x384xf32> to vector<8x384xf32>
    %cst = arith.constant dense<0.000000e+00> : vector<8x256xf32>
    %23 = tpu.matmul %19, %14, %cst {dimension_numbers = #tpu.dot_dimension_numbers<[1], [0], [0], [1], [0, 0, 1, 1], [], []>} : vector<8x128xf32>, vector<128x256xf32>, vector<8x256xf32> -> vector<8x256xf32>
    %24 = vector.extract_strided_slice %22 {offsets = [0, 0], sizes = [8, 128], strides = [1, 1]} : vector<8x384xf32> to vector<8x128xf32>
    %25 = vector.extract_strided_slice %23 {offsets = [0, 0], sizes = [8, 128], strides = [1, 1]} : vector<8x256xf32> to vector<8x128xf32>
    %26 = arith.addf %24, %25 : vector<8x128xf32>
    %27 = arith.negf %26 : vector<8x128xf32>
    %28 = math.exp %27 : vector<8x128xf32>
    %cst_21 = arith.constant 1.000000e+00 : f32
    %29 = vector.broadcast %cst_21 : f32 to vector<8x128xf32>
    %30 = arith.addf %29, %28 : vector<8x128xf32>
    %31 = arith.divf %29, %30 : vector<8x128xf32>
    %32 = vector.extract_strided_slice %22 {offsets = [0, 128], sizes = [8, 128], strides = [1, 1]} : vector<8x384xf32> to vector<8x128xf32>
    %33 = vector.extract_strided_slice %23 {offsets = [0, 128], sizes = [8, 128], strides = [1, 1]} : vector<8x256xf32> to vector<8x128xf32>
    %34 = arith.addf %32, %33 : vector<8x128xf32>
    %35 = arith.negf %34 : vector<8x128xf32>
    %36 = math.exp %35 : vector<8x128xf32>
    %cst_22 = arith.constant 1.000000e+00 : f32
    %37 = vector.broadcast %cst_22 : f32 to vector<8x128xf32>
    %38 = arith.addf %37, %36 : vector<8x128xf32>
    %39 = arith.divf %37, %38 : vector<8x128xf32>
    %cst_23 = arith.constant dense<0.000000e+00> : vector<8x128xf32>
    %40 = tpu.matmul %19, %15, %cst_23 {dimension_numbers = #tpu.dot_dimension_numbers<[1], [0], [0], [1], [0, 0, 1, 1], [], []>} : vector<8x128xf32>, vector<128x128xf32>, vector<8x128xf32> -> vector<8x128xf32>
    %41 = vector.extract_strided_slice %22 {offsets = [0, 256], sizes = [8, 128], strides = [1, 1]} : vector<8x384xf32> to vector<8x128xf32>
    %42 = arith.addf %40, %18 : vector<8x128xf32>
    %43 = arith.mulf %31, %42 : vector<8x128xf32>
    %44 = arith.addf %41, %43 : vector<8x128xf32>
    %45 = math.tanh %44 : vector<8x128xf32>
    %cst_24 = arith.constant 1.000000e+00 : f32
    %46 = vector.broadcast %cst_24 : f32 to vector<8x128xf32>
    %47 = arith.subf %46, %39 : vector<8x128xf32>
    %48 = arith.mulf %47, %45 : vector<8x128xf32>
    %49 = arith.mulf %39, %19 : vector<8x128xf32>
    %50 = arith.addf %48, %49 : vector<8x128xf32>
    %51 = arith.index_cast %c0_i32_18 : i32 to index
    %c0_25 = arith.constant 0 : index
    %c0_26 = arith.constant 0 : index
    %52 = vector.load %arg15[%51, %c0_25, %c0_26] : memref<8x8x128xf32, #tpu.memory_space<vmem>>, vector<1x8x128xf32>
    %53 = vector.shape_cast %52 : vector<1x8x128xf32> to vector<8x128xf32>
    %54 = vector.shape_cast %50 : vector<8x128xf32> to vector<1x8x128xf32>
    tpu.vector_store %arg15[%51, %c0_25, %c0_26], %54 {strides = array<i32>} : memref<8x8x128xf32, #tpu.memory_space<vmem>>, vector<1x8x128xf32>,
    %c1_i32 = arith.constant 1 : i32
    %55 = arith.index_cast %c1_i32 : i32 to index
    %c0_27 = arith.constant 0 : index
    %c0_28 = arith.constant 0 : index
    %56 = vector.load %arg14[%55, %c0_27, %c0_28] : memref<8x8x384xf32, #tpu.memory_space<vmem>>, vector<1x8x384xf32>
    %57 = vector.shape_cast %56 : vector<1x8x384xf32> to vector<8x384xf32>
    %cst_29 = arith.constant dense<0.000000e+00> : vector<8x256xf32>
    %58 = tpu.matmul %50, %14, %cst_29 {dimension_numbers = #tpu.dot_dimension_numbers<[1], [0], [0], [1], [0, 0, 1, 1], [], []>} : vector<8x128xf32>, vector<128x256xf32>, vector<8x256xf32> -> vector<8x256xf32>
    %59 = vector.extract_strided_slice %57 {offsets = [0, 0], sizes = [8, 128], strides = [1, 1]} : vector<8x384xf32> to vector<8x128xf32>
    %60 = vector.extract_strided_slice %58 {offsets = [0, 0], sizes = [8, 128], strides = [1, 1]} : vector<8x256xf32> to vector<8x128xf32>
    %61 = arith.addf %59, %60 : vector<8x128xf32>
    %62 = arith.negf %61 : vector<8x128xf32>
    %63 = math.exp %62 : vector<8x128xf32>
    %cst_30 = arith.constant 1.000000e+00 : f32
    %64 = vector.broadcast %cst_30 : f32 to vector<8x128xf32>
    %65 = arith.addf %64, %63 : vector<8x128xf32>
    %66 = arith.divf %64, %65 : vector<8x128xf32>
    %67 = vector.extract_strided_slice %57 {offsets = [0, 128], sizes = [8, 128], strides = [1, 1]} : vector<8x384xf32> to vector<8x128xf32>
    %68 = vector.extract_strided_slice %58 {offsets = [0, 128], sizes = [8, 128], strides = [1, 1]} : vector<8x256xf32> to vector<8x128xf32>
    %69 = arith.addf %67, %68 : vector<8x128xf32>
    %70 = arith.negf %69 : vector<8x128xf32>
    %71 = math.exp %70 : vector<8x128xf32>
    %cst_31 = arith.constant 1.000000e+00 : f32
    %72 = vector.broadcast %cst_31 : f32 to vector<8x128xf32>
    %73 = arith.addf %72, %71 : vector<8x128xf32>
    %74 = arith.divf %72, %73 : vector<8x128xf32>
    %cst_32 = arith.constant dense<0.000000e+00> : vector<8x128xf32>
    %75 = tpu.matmul %50, %15, %cst_32 {dimension_numbers = #tpu.dot_dimension_numbers<[1], [0], [0], [1], [0, 0, 1, 1], [], []>} : vector<8x128xf32>, vector<128x128xf32>, vector<8x128xf32> -> vector<8x128xf32>
    %76 = vector.extract_strided_slice %57 {offsets = [0, 256], sizes = [8, 128], strides = [1, 1]} : vector<8x384xf32> to vector<8x128xf32>
    %77 = arith.addf %75, %18 : vector<8x128xf32>
    %78 = arith.mulf %66, %77 : vector<8x128xf32>
    %79 = arith.addf %76, %78 : vector<8x128xf32>
    %80 = math.tanh %79 : vector<8x128xf32>
    %cst_33 = arith.constant 1.000000e+00 : f32
    %81 = vector.broadcast %cst_33 : f32 to vector<8x128xf32>
    %82 = arith.subf %81, %74 : vector<8x128xf32>
    %83 = arith.mulf %82, %80 : vector<8x128xf32>
    %84 = arith.mulf %74, %50 : vector<8x128xf32>
    %85 = arith.addf %83, %84 : vector<8x128xf32>
    %86 = arith.index_cast %c1_i32 : i32 to index
    %c0_34 = arith.constant 0 : index
    %c0_35 = arith.constant 0 : index
    %87 = vector.load %arg15[%86, %c0_34, %c0_35] : memref<8x8x128xf32, #tpu.memory_space<vmem>>, vector<1x8x128xf32>
    %88 = vector.shape_cast %87 : vector<1x8x128xf32> to vector<8x128xf32>
    %89 = vector.shape_cast %85 : vector<8x128xf32> to vector<1x8x128xf32>
    tpu.vector_store %arg15[%86, %c0_34, %c0_35], %89 {strides = array<i32>} : memref<8x8x128xf32, #tpu.memory_space<vmem>>, vector<1x8x128xf32>,
    %c2_i32 = arith.constant 2 : i32
    %90 = arith.index_cast %c2_i32 : i32 to index
    %c0_36 = arith.constant 0 : index
    %c0_37 = arith.constant 0 : index
    %91 = vector.load %arg14[%90, %c0_36, %c0_37] : memref<8x8x384xf32, #tpu.memory_space<vmem>>, vector<1x8x384xf32>
    %92 = vector.shape_cast %91 : vector<1x8x384xf32> to vector<8x384xf32>
    %cst_38 = arith.constant dense<0.000000e+00> : vector<8x256xf32>
    %93 = tpu.matmul %85, %14, %cst_38 {dimension_numbers = #tpu.dot_dimension_numbers<[1], [0], [0], [1], [0, 0, 1, 1], [], []>} : vector<8x128xf32>, vector<128x256xf32>, vector<8x256xf32> -> vector<8x256xf32>
    %94 = vector.extract_strided_slice %92 {offsets = [0, 0], sizes = [8, 128], strides = [1, 1]} : vector<8x384xf32> to vector<8x128xf32>
    %95 = vector.extract_strided_slice %93 {offsets = [0, 0], sizes = [8, 128], strides = [1, 1]} : vector<8x256xf32> to vector<8x128xf32>
    %96 = arith.addf %94, %95 : vector<8x128xf32>
    %97 = arith.negf %96 : vector<8x128xf32>
    %98 = math.exp %97 : vector<8x128xf32>
    %cst_39 = arith.constant 1.000000e+00 : f32
    %99 = vector.broadcast %cst_39 : f32 to vector<8x128xf32>
    %100 = arith.addf %99, %98 : vector<8x128xf32>
    %101 = arith.divf %99, %100 : vector<8x128xf32>
    %102 = vector.extract_strided_slice %92 {offsets = [0, 128], sizes = [8, 128], strides = [1, 1]} : vector<8x384xf32> to vector<8x128xf32>
    %103 = vector.extract_strided_slice %93 {offsets = [0, 128], sizes = [8, 128], strides = [1, 1]} : vector<8x256xf32> to vector<8x128xf32>
    %104 = arith.addf %102, %103 : vector<8x128xf32>
    %105 = arith.negf %104 : vector<8x128xf32>
    %106 = math.exp %105 : vector<8x128xf32>
    %cst_40 = arith.constant 1.000000e+00 : f32
    %107 = vector.broadcast %cst_40 : f32 to vector<8x128xf32>
    %108 = arith.addf %107, %106 : vector<8x128xf32>
    %109 = arith.divf %107, %108 : vector<8x128xf32>
    %cst_41 = arith.constant dense<0.000000e+00> : vector<8x128xf32>
    %110 = tpu.matmul %85, %15, %cst_41 {dimension_numbers = #tpu.dot_dimension_numbers<[1], [0], [0], [1], [0, 0, 1, 1], [], []>} : vector<8x128xf32>, vector<128x128xf32>, vector<8x128xf32> -> vector<8x128xf32>
    %111 = vector.extract_strided_slice %92 {offsets = [0, 256], sizes = [8, 128], strides = [1, 1]} : vector<8x384xf32> to vector<8x128xf32>
    %112 = arith.addf %110, %18 : vector<8x128xf32>
    %113 = arith.mulf %101, %112 : vector<8x128xf32>
    %114 = arith.addf %111, %113 : vector<8x128xf32>
    %115 = math.tanh %114 : vector<8x128xf32>
    %cst_42 = arith.constant 1.000000e+00 : f32
    %116 = vector.broadcast %cst_42 : f32 to vector<8x128xf32>
    %117 = arith.subf %116, %109 : vector<8x128xf32>
    %118 = arith.mulf %117, %115 : vector<8x128xf32>
    %119 = arith.mulf %109, %85 : vector<8x128xf32>
    %120 = arith.addf %118, %119 : vector<8x128xf32>
    %121 = arith.index_cast %c2_i32 : i32 to index
    %c0_43 = arith.constant 0 : index
    %c0_44 = arith.constant 0 : index
    %122 = vector.load %arg15[%121, %c0_43, %c0_44] : memref<8x8x128xf32, #tpu.memory_space<vmem>>, vector<1x8x128xf32>
    %123 = vector.shape_cast %122 : vector<1x8x128xf32> to vector<8x128xf32>
    %124 = vector.shape_cast %120 : vector<8x128xf32> to vector<1x8x128xf32>
    tpu.vector_store %arg15[%121, %c0_43, %c0_44], %124 {strides = array<i32>} : memref<8x8x128xf32, #tpu.memory_space<vmem>>, vector<1x8x128xf32>,
    %c3_i32 = arith.constant 3 : i32
    %125 = arith.index_cast %c3_i32 : i32 to index
    %c0_45 = arith.constant 0 : index
    %c0_46 = arith.constant 0 : index
    %126 = vector.load %arg14[%125, %c0_45, %c0_46] : memref<8x8x384xf32, #tpu.memory_space<vmem>>, vector<1x8x384xf32>
    %127 = vector.shape_cast %126 : vector<1x8x384xf32> to vector<8x384xf32>
    %cst_47 = arith.constant dense<0.000000e+00> : vector<8x256xf32>
    %128 = tpu.matmul %120, %14, %cst_47 {dimension_numbers = #tpu.dot_dimension_numbers<[1], [0], [0], [1], [0, 0, 1, 1], [], []>} : vector<8x128xf32>, vector<128x256xf32>, vector<8x256xf32> -> vector<8x256xf32>
    %129 = vector.extract_strided_slice %127 {offsets = [0, 0], sizes = [8, 128], strides = [1, 1]} : vector<8x384xf32> to vector<8x128xf32>
    %130 = vector.extract_strided_slice %128 {offsets = [0, 0], sizes = [8, 128], strides = [1, 1]} : vector<8x256xf32> to vector<8x128xf32>
    %131 = arith.addf %129, %130 : vector<8x128xf32>
    %132 = arith.negf %131 : vector<8x128xf32>
    %133 = math.exp %132 : vector<8x128xf32>
    %cst_48 = arith.constant 1.000000e+00 : f32
    %134 = vector.broadcast %cst_48 : f32 to vector<8x128xf32>
    %135 = arith.addf %134, %133 : vector<8x128xf32>
    %136 = arith.divf %134, %135 : vector<8x128xf32>
    %137 = vector.extract_strided_slice %127 {offsets = [0, 128], sizes = [8, 128], strides = [1, 1]} : vector<8x384xf32> to vector<8x128xf32>
    %138 = vector.extract_strided_slice %128 {offsets = [0, 128], sizes = [8, 128], strides = [1, 1]} : vector<8x256xf32> to vector<8x128xf32>
    %139 = arith.addf %137, %138 : vector<8x128xf32>
    %140 = arith.negf %139 : vector<8x128xf32>
    %141 = math.exp %140 : vector<8x128xf32>
    %cst_49 = arith.constant 1.000000e+00 : f32
    %142 = vector.broadcast %cst_49 : f32 to vector<8x128xf32>
    %143 = arith.addf %142, %141 : vector<8x128xf32>
    %144 = arith.divf %142, %143 : vector<8x128xf32>
    %cst_50 = arith.constant dense<0.000000e+00> : vector<8x128xf32>
    %145 = tpu.matmul %120, %15, %cst_50 {dimension_numbers = #tpu.dot_dimension_numbers<[1], [0], [0], [1], [0, 0, 1, 1], [], []>} : vector<8x128xf32>, vector<128x128xf32>, vector<8x128xf32> -> vector<8x128xf32>
    %146 = vector.extract_strided_slice %127 {offsets = [0, 256], sizes = [8, 128], strides = [1, 1]} : vector<8x384xf32> to vector<8x128xf32>
    %147 = arith.addf %145, %18 : vector<8x128xf32>
    %148 = arith.mulf %136, %147 : vector<8x128xf32>
    %149 = arith.addf %146, %148 : vector<8x128xf32>
    %150 = math.tanh %149 : vector<8x128xf32>
    %cst_51 = arith.constant 1.000000e+00 : f32
    %151 = vector.broadcast %cst_51 : f32 to vector<8x128xf32>
    %152 = arith.subf %151, %144 : vector<8x128xf32>
    %153 = arith.mulf %152, %150 : vector<8x128xf32>
    %154 = arith.mulf %144, %120 : vector<8x128xf32>
    %155 = arith.addf %153, %154 : vector<8x128xf32>
    %156 = arith.index_cast %c3_i32 : i32 to index
    %c0_52 = arith.constant 0 : index
    %c0_53 = arith.constant 0 : index
    %157 = vector.load %arg15[%156, %c0_52, %c0_53] : memref<8x8x128xf32, #tpu.memory_space<vmem>>, vector<1x8x128xf32>
    %158 = vector.shape_cast %157 : vector<1x8x128xf32> to vector<8x128xf32>
    %159 = vector.shape_cast %155 : vector<8x128xf32> to vector<1x8x128xf32>
    tpu.vector_store %arg15[%156, %c0_52, %c0_53], %159 {strides = array<i32>} : memref<8x8x128xf32, #tpu.memory_space<vmem>>, vector<1x8x128xf32>,
    %c4_i32 = arith.constant 4 : i32
    %160 = arith.index_cast %c4_i32 : i32 to index
    %c0_54 = arith.constant 0 : index
    %c0_55 = arith.constant 0 : index
    %161 = vector.load %arg14[%160, %c0_54, %c0_55] : memref<8x8x384xf32, #tpu.memory_space<vmem>>, vector<1x8x384xf32>
    %162 = vector.shape_cast %161 : vector<1x8x384xf32> to vector<8x384xf32>
    %cst_56 = arith.constant dense<0.000000e+00> : vector<8x256xf32>
    %163 = tpu.matmul %155, %14, %cst_56 {dimension_numbers = #tpu.dot_dimension_numbers<[1], [0], [0], [1], [0, 0, 1, 1], [], []>} : vector<8x128xf32>, vector<128x256xf32>, vector<8x256xf32> -> vector<8x256xf32>
    %164 = vector.extract_strided_slice %162 {offsets = [0, 0], sizes = [8, 128], strides = [1, 1]} : vector<8x384xf32> to vector<8x128xf32>
    %165 = vector.extract_strided_slice %163 {offsets = [0, 0], sizes = [8, 128], strides = [1, 1]} : vector<8x256xf32> to vector<8x128xf32>
    %166 = arith.addf %164, %165 : vector<8x128xf32>
    %167 = arith.negf %166 : vector<8x128xf32>
    %168 = math.exp %167 : vector<8x128xf32>
    %cst_57 = arith.constant 1.000000e+00 : f32
    %169 = vector.broadcast %cst_57 : f32 to vector<8x128xf32>
    %170 = arith.addf %169, %168 : vector<8x128xf32>
    %171 = arith.divf %169, %170 : vector<8x128xf32>
    %172 = vector.extract_strided_slice %162 {offsets = [0, 128], sizes = [8, 128], strides = [1, 1]} : vector<8x384xf32> to vector<8x128xf32>
    %173 = vector.extract_strided_slice %163 {offsets = [0, 128], sizes = [8, 128], strides = [1, 1]} : vector<8x256xf32> to vector<8x128xf32>
    %174 = arith.addf %172, %173 : vector<8x128xf32>
    %175 = arith.negf %174 : vector<8x128xf32>
    %176 = math.exp %175 : vector<8x128xf32>
    %cst_58 = arith.constant 1.000000e+00 : f32
    %177 = vector.broadcast %cst_58 : f32 to vector<8x128xf32>
    %178 = arith.addf %177, %176 : vector<8x128xf32>
    %179 = arith.divf %177, %178 : vector<8x128xf32>
    %cst_59 = arith.constant dense<0.000000e+00> : vector<8x128xf32>
    %180 = tpu.matmul %155, %15, %cst_59 {dimension_numbers = #tpu.dot_dimension_numbers<[1], [0], [0], [1], [0, 0, 1, 1], [], []>} : vector<8x128xf32>, vector<128x128xf32>, vector<8x128xf32> -> vector<8x128xf32>
    %181 = vector.extract_strided_slice %162 {offsets = [0, 256], sizes = [8, 128], strides = [1, 1]} : vector<8x384xf32> to vector<8x128xf32>
    %182 = arith.addf %180, %18 : vector<8x128xf32>
    %183 = arith.mulf %171, %182 : vector<8x128xf32>
    %184 = arith.addf %181, %183 : vector<8x128xf32>
    %185 = math.tanh %184 : vector<8x128xf32>
    %cst_60 = arith.constant 1.000000e+00 : f32
    %186 = vector.broadcast %cst_60 : f32 to vector<8x128xf32>
    %187 = arith.subf %186, %179 : vector<8x128xf32>
    %188 = arith.mulf %187, %185 : vector<8x128xf32>
    %189 = arith.mulf %179, %155 : vector<8x128xf32>
    %190 = arith.addf %188, %189 : vector<8x128xf32>
    %191 = arith.index_cast %c4_i32 : i32 to index
    %c0_61 = arith.constant 0 : index
    %c0_62 = arith.constant 0 : index
    %192 = vector.load %arg15[%191, %c0_61, %c0_62] : memref<8x8x128xf32, #tpu.memory_space<vmem>>, vector<1x8x128xf32>
    %193 = vector.shape_cast %192 : vector<1x8x128xf32> to vector<8x128xf32>
    %194 = vector.shape_cast %190 : vector<8x128xf32> to vector<1x8x128xf32>
    tpu.vector_store %arg15[%191, %c0_61, %c0_62], %194 {strides = array<i32>} : memref<8x8x128xf32, #tpu.memory_space<vmem>>, vector<1x8x128xf32>,
    %c5_i32 = arith.constant 5 : i32
    %195 = arith.index_cast %c5_i32 : i32 to index
    %c0_63 = arith.constant 0 : index
    %c0_64 = arith.constant 0 : index
    %196 = vector.load %arg14[%195, %c0_63, %c0_64] : memref<8x8x384xf32, #tpu.memory_space<vmem>>, vector<1x8x384xf32>
    %197 = vector.shape_cast %196 : vector<1x8x384xf32> to vector<8x384xf32>
    %cst_65 = arith.constant dense<0.000000e+00> : vector<8x256xf32>
    %198 = tpu.matmul %190, %14, %cst_65 {dimension_numbers = #tpu.dot_dimension_numbers<[1], [0], [0], [1], [0, 0, 1, 1], [], []>} : vector<8x128xf32>, vector<128x256xf32>, vector<8x256xf32> -> vector<8x256xf32>
    %199 = vector.extract_strided_slice %197 {offsets = [0, 0], sizes = [8, 128], strides = [1, 1]} : vector<8x384xf32> to vector<8x128xf32>
    %200 = vector.extract_strided_slice %198 {offsets = [0, 0], sizes = [8, 128], strides = [1, 1]} : vector<8x256xf32> to vector<8x128xf32>
    %201 = arith.addf %199, %200 : vector<8x128xf32>
    %202 = arith.negf %201 : vector<8x128xf32>
    %203 = math.exp %202 : vector<8x128xf32>
    %cst_66 = arith.constant 1.000000e+00 : f32
    %204 = vector.broadcast %cst_66 : f32 to vector<8x128xf32>
    %205 = arith.addf %204, %203 : vector<8x128xf32>
    %206 = arith.divf %204, %205 : vector<8x128xf32>
    %207 = vector.extract_strided_slice %197 {offsets = [0, 128], sizes = [8, 128], strides = [1, 1]} : vector<8x384xf32> to vector<8x128xf32>
    %208 = vector.extract_strided_slice %198 {offsets = [0, 128], sizes = [8, 128], strides = [1, 1]} : vector<8x256xf32> to vector<8x128xf32>
    %209 = arith.addf %207, %208 : vector<8x128xf32>
    %210 = arith.negf %209 : vector<8x128xf32>
    %211 = math.exp %210 : vector<8x128xf32>
    %cst_67 = arith.constant 1.000000e+00 : f32
    %212 = vector.broadcast %cst_67 : f32 to vector<8x128xf32>
    %213 = arith.addf %212, %211 : vector<8x128xf32>
    %214 = arith.divf %212, %213 : vector<8x128xf32>
    %cst_68 = arith.constant dense<0.000000e+00> : vector<8x128xf32>
    %215 = tpu.matmul %190, %15, %cst_68 {dimension_numbers = #tpu.dot_dimension_numbers<[1], [0], [0], [1], [0, 0, 1, 1], [], []>} : vector<8x128xf32>, vector<128x128xf32>, vector<8x128xf32> -> vector<8x128xf32>
    %216 = vector.extract_strided_slice %197 {offsets = [0, 256], sizes = [8, 128], strides = [1, 1]} : vector<8x384xf32> to vector<8x128xf32>
    %217 = arith.addf %215, %18 : vector<8x128xf32>
    %218 = arith.mulf %206, %217 : vector<8x128xf32>
    %219 = arith.addf %216, %218 : vector<8x128xf32>
    %220 = math.tanh %219 : vector<8x128xf32>
    %cst_69 = arith.constant 1.000000e+00 : f32
    %221 = vector.broadcast %cst_69 : f32 to vector<8x128xf32>
    %222 = arith.subf %221, %214 : vector<8x128xf32>
    %223 = arith.mulf %222, %220 : vector<8x128xf32>
    %224 = arith.mulf %214, %190 : vector<8x128xf32>
    %225 = arith.addf %223, %224 : vector<8x128xf32>
    %226 = arith.index_cast %c5_i32 : i32 to index
    %c0_70 = arith.constant 0 : index
    %c0_71 = arith.constant 0 : index
    %227 = vector.load %arg15[%226, %c0_70, %c0_71] : memref<8x8x128xf32, #tpu.memory_space<vmem>>, vector<1x8x128xf32>
    %228 = vector.shape_cast %227 : vector<1x8x128xf32> to vector<8x128xf32>
    %229 = vector.shape_cast %225 : vector<8x128xf32> to vector<1x8x128xf32>
    tpu.vector_store %arg15[%226, %c0_70, %c0_71], %229 {strides = array<i32>} : memref<8x8x128xf32, #tpu.memory_space<vmem>>, vector<1x8x128xf32>,
    %c6_i32 = arith.constant 6 : i32
    %230 = arith.index_cast %c6_i32 : i32 to index
    %c0_72 = arith.constant 0 : index
    %c0_73 = arith.constant 0 : index
    %231 = vector.load %arg14[%230, %c0_72, %c0_73] : memref<8x8x384xf32, #tpu.memory_space<vmem>>, vector<1x8x384xf32>
    %232 = vector.shape_cast %231 : vector<1x8x384xf32> to vector<8x384xf32>
    %cst_74 = arith.constant dense<0.000000e+00> : vector<8x256xf32>
    %233 = tpu.matmul %225, %14, %cst_74 {dimension_numbers = #tpu.dot_dimension_numbers<[1], [0], [0], [1], [0, 0, 1, 1], [], []>} : vector<8x128xf32>, vector<128x256xf32>, vector<8x256xf32> -> vector<8x256xf32>
    %234 = vector.extract_strided_slice %232 {offsets = [0, 0], sizes = [8, 128], strides = [1, 1]} : vector<8x384xf32> to vector<8x128xf32>
    %235 = vector.extract_strided_slice %233 {offsets = [0, 0], sizes = [8, 128], strides = [1, 1]} : vector<8x256xf32> to vector<8x128xf32>
    %236 = arith.addf %234, %235 : vector<8x128xf32>
    %237 = arith.negf %236 : vector<8x128xf32>
    %238 = math.exp %237 : vector<8x128xf32>
    %cst_75 = arith.constant 1.000000e+00 : f32
    %239 = vector.broadcast %cst_75 : f32 to vector<8x128xf32>
    %240 = arith.addf %239, %238 : vector<8x128xf32>
    %241 = arith.divf %239, %240 : vector<8x128xf32>
    %242 = vector.extract_strided_slice %232 {offsets = [0, 128], sizes = [8, 128], strides = [1, 1]} : vector<8x384xf32> to vector<8x128xf32>
    %243 = vector.extract_strided_slice %233 {offsets = [0, 128], sizes = [8, 128], strides = [1, 1]} : vector<8x256xf32> to vector<8x128xf32>
    %244 = arith.addf %242, %243 : vector<8x128xf32>
    %245 = arith.negf %244 : vector<8x128xf32>
    %246 = math.exp %245 : vector<8x128xf32>
    %cst_76 = arith.constant 1.000000e+00 : f32
    %247 = vector.broadcast %cst_76 : f32 to vector<8x128xf32>
    %248 = arith.addf %247, %246 : vector<8x128xf32>
    %249 = arith.divf %247, %248 : vector<8x128xf32>
    %cst_77 = arith.constant dense<0.000000e+00> : vector<8x128xf32>
    %250 = tpu.matmul %225, %15, %cst_77 {dimension_numbers = #tpu.dot_dimension_numbers<[1], [0], [0], [1], [0, 0, 1, 1], [], []>} : vector<8x128xf32>, vector<128x128xf32>, vector<8x128xf32> -> vector<8x128xf32>
    %251 = vector.extract_strided_slice %232 {offsets = [0, 256], sizes = [8, 128], strides = [1, 1]} : vector<8x384xf32> to vector<8x128xf32>
    %252 = arith.addf %250, %18 : vector<8x128xf32>
    %253 = arith.mulf %241, %252 : vector<8x128xf32>
    %254 = arith.addf %251, %253 : vector<8x128xf32>
    %255 = math.tanh %254 : vector<8x128xf32>
    %cst_78 = arith.constant 1.000000e+00 : f32
    %256 = vector.broadcast %cst_78 : f32 to vector<8x128xf32>
    %257 = arith.subf %256, %249 : vector<8x128xf32>
    %258 = arith.mulf %257, %255 : vector<8x128xf32>
    %259 = arith.mulf %249, %225 : vector<8x128xf32>
    %260 = arith.addf %258, %259 : vector<8x128xf32>
    %261 = arith.index_cast %c6_i32 : i32 to index
    %c0_79 = arith.constant 0 : index
    %c0_80 = arith.constant 0 : index
    %262 = vector.load %arg15[%261, %c0_79, %c0_80] : memref<8x8x128xf32, #tpu.memory_space<vmem>>, vector<1x8x128xf32>
    %263 = vector.shape_cast %262 : vector<1x8x128xf32> to vector<8x128xf32>
    %264 = vector.shape_cast %260 : vector<8x128xf32> to vector<1x8x128xf32>
    tpu.vector_store %arg15[%261, %c0_79, %c0_80], %264 {strides = array<i32>} : memref<8x8x128xf32, #tpu.memory_space<vmem>>, vector<1x8x128xf32>,
    %c7_i32 = arith.constant 7 : i32
    %265 = arith.index_cast %c7_i32 : i32 to index
    %c0_81 = arith.constant 0 : index
    %c0_82 = arith.constant 0 : index
    %266 = vector.load %arg14[%265, %c0_81, %c0_82] : memref<8x8x384xf32, #tpu.memory_space<vmem>>, vector<1x8x384xf32>
    %267 = vector.shape_cast %266 : vector<1x8x384xf32> to vector<8x384xf32>
    %cst_83 = arith.constant dense<0.000000e+00> : vector<8x256xf32>
    %268 = tpu.matmul %260, %14, %cst_83 {dimension_numbers = #tpu.dot_dimension_numbers<[1], [0], [0], [1], [0, 0, 1, 1], [], []>} : vector<8x128xf32>, vector<128x256xf32>, vector<8x256xf32> -> vector<8x256xf32>
    %269 = vector.extract_strided_slice %267 {offsets = [0, 0], sizes = [8, 128], strides = [1, 1]} : vector<8x384xf32> to vector<8x128xf32>
    %270 = vector.extract_strided_slice %268 {offsets = [0, 0], sizes = [8, 128], strides = [1, 1]} : vector<8x256xf32> to vector<8x128xf32>
    %271 = arith.addf %269, %270 : vector<8x128xf32>
    %272 = arith.negf %271 : vector<8x128xf32>
    %273 = math.exp %272 : vector<8x128xf32>
    %cst_84 = arith.constant 1.000000e+00 : f32
    %274 = vector.broadcast %cst_84 : f32 to vector<8x128xf32>
    %275 = arith.addf %274, %273 : vector<8x128xf32>
    %276 = arith.divf %274, %275 : vector<8x128xf32>
    %277 = vector.extract_strided_slice %267 {offsets = [0, 128], sizes = [8, 128], strides = [1, 1]} : vector<8x384xf32> to vector<8x128xf32>
    %278 = vector.extract_strided_slice %268 {offsets = [0, 128], sizes = [8, 128], strides = [1, 1]} : vector<8x256xf32> to vector<8x128xf32>
    %279 = arith.addf %277, %278 : vector<8x128xf32>
    %280 = arith.negf %279 : vector<8x128xf32>
    %281 = math.exp %280 : vector<8x128xf32>
    %cst_85 = arith.constant 1.000000e+00 : f32
    %282 = vector.broadcast %cst_85 : f32 to vector<8x128xf32>
    %283 = arith.addf %282, %281 : vector<8x128xf32>
    %284 = arith.divf %282, %283 : vector<8x128xf32>
    %cst_86 = arith.constant dense<0.000000e+00> : vector<8x128xf32>
    %285 = tpu.matmul %260, %15, %cst_86 {dimension_numbers = #tpu.dot_dimension_numbers<[1], [0], [0], [1], [0, 0, 1, 1], [], []>} : vector<8x128xf32>, vector<128x128xf32>, vector<8x128xf32> -> vector<8x128xf32>
    %286 = vector.extract_strided_slice %267 {offsets = [0, 256], sizes = [8, 128], strides = [1, 1]} : vector<8x384xf32> to vector<8x128xf32>
    %287 = arith.addf %285, %18 : vector<8x128xf32>
    %288 = arith.mulf %276, %287 : vector<8x128xf32>
    %289 = arith.addf %286, %288 : vector<8x128xf32>
    %290 = math.tanh %289 : vector<8x128xf32>
    %cst_87 = arith.constant 1.000000e+00 : f32
    %291 = vector.broadcast %cst_87 : f32 to vector<8x128xf32>
    %292 = arith.subf %291, %284 : vector<8x128xf32>
    %293 = arith.mulf %292, %290 : vector<8x128xf32>
    %294 = arith.mulf %284, %260 : vector<8x128xf32>
    %295 = arith.addf %293, %294 : vector<8x128xf32>
    %296 = arith.index_cast %c7_i32 : i32 to index
    %c0_88 = arith.constant 0 : index
    %c0_89 = arith.constant 0 : index
    %297 = vector.load %arg15[%296, %c0_88, %c0_89] : memref<8x8x128xf32, #tpu.memory_space<vmem>>, vector<1x8x128xf32>
    %298 = vector.shape_cast %297 : vector<1x8x128xf32> to vector<8x128xf32>
    %299 = vector.shape_cast %295 : vector<8x128xf32> to vector<1x8x128xf32>
    tpu.vector_store %arg15[%296, %c0_88, %c0_89], %299 {strides = array<i32>} : memref<8x8x128xf32, #tpu.memory_space<vmem>>, vector<1x8x128xf32>,
    %c8_i32 = arith.constant 8 : i32
    %c0_90 = arith.constant 0 : index
    %c0_91 = arith.constant 0 : index
    %300 = vector.load %arg13[%c0_90, %c0_91] : memref<8x128xf32, #tpu.memory_space<vmem>>, vector<8x128xf32>
    tpu.vector_store %arg13[%c0_90, %c0_91], %295 {strides = array<i32>} : memref<8x128xf32, #tpu.memory_space<vmem>>, vector<8x128xf32>,
    %c0_i32_92 = arith.constant 0 : i32
    %301 = arith.cmpi eq, %arg1, %c0_i32_92 : i32
    %302 = arith.extui %301 : i1 to i32
    %c0_i32_93 = arith.constant 0 : i32
    %303 = arith.cmpi ne, %302, %c0_i32_93 : i32
    scf.if %303 {
      %c0_105 = arith.constant 0 : index
      %c0_106 = arith.constant 0 : index
      %313 = vector.load %arg12[%c0_105, %c0_106] : memref<8x128xf32, #tpu.memory_space<vmem>>, vector<8x128xf32>
      tpu.vector_store %arg12[%c0_105, %c0_106], %295 {strides = array<i32>} : memref<8x128xf32, #tpu.memory_space<vmem>>, vector<8x128xf32>,
    } else {
    }
    %c0_94 = arith.constant 0 : index
    %c0_95 = arith.constant 0 : index
    %c0_96 = arith.constant 0 : index
    %304 = vector.load %arg15[%c0_94, %c0_95, %c0_96] : memref<8x8x128xf32, #tpu.memory_space<vmem>>, vector<8x8x128xf32>
    %305 = vector.shape_cast %304 : vector<8x8x128xf32> to vector<64x128xf32>
    %c0_97 = arith.constant 0 : index
    %c0_98 = arith.constant 0 : index
    %306 = vector.load %arg9[%c0_97, %c0_98] : memref<128x128xf32, #tpu.memory_space<vmem>>, vector<128x128xf32>
    %cst_99 = arith.constant dense<0.000000e+00> : vector<64x128xf32>
    %307 = tpu.matmul %305, %306, %cst_99 {dimension_numbers = #tpu.dot_dimension_numbers<[1], [0], [0], [1], [0, 0, 1, 1], [], []>} : vector<64x128xf32>, vector<128x128xf32>, vector<64x128xf32> -> vector<64x128xf32>
    %c0_100 = arith.constant 0 : index
    %c0_101 = arith.constant 0 : index
    %308 = vector.load %arg10[%c0_100, %c0_101] : memref<1x128xf32, #tpu.memory_space<vmem>>, vector<1x128xf32>
    %309 = vector.broadcast %308 : vector<1x128xf32> to vector<64x128xf32>
    %310 = arith.addf %307, %309 : vector<64x128xf32>
    %311 = vector.shape_cast %310 : vector<64x128xf32> to vector<8x8x128xf32>
    %c0_102 = arith.constant 0 : index
    %c0_103 = arith.constant 0 : index
    %c0_104 = arith.constant 0 : index
    %312 = vector.load %arg11[%c0_102, %c0_103, %c0_104] : memref<8x8x128xf32, #tpu.memory_space<vmem>>, vector<8x8x128xf32>
    tpu.vector_store %arg11[%c0_102, %c0_103, %c0_104], %311 {strides = array<i32>} : memref<8x8x128xf32, #tpu.memory_space<vmem>>, vector<8x8x128xf32>,
    return
  }
  func.func @transform_0(%arg0: i32, %arg1: i32) -> (i32, i32, i32) {
    %c0_i32 = arith.constant 0 : i32
    %c0_i32_0 = arith.constant 0 : i32
    return %arg1, %arg0, %c0_i32 : i32, i32, i32
  }
  func.func @transform_1(%arg0: i32, %arg1: i32) -> (i32, i32) {
    %c0_i32 = arith.constant 0 : i32
    %c0_i32_0 = arith.constant 0 : i32
    return %arg0, %c0_i32 : i32, i32
  }
  func.func @transform_2(%arg0: i32, %arg1: i32) -> (i32, i32) {
    %c0_i32 = arith.constant 0 : i32
    %c0_i32_0 = arith.constant 0 : i32
    %c0_i32_1 = arith.constant 0 : i32
    return %c0_i32, %c0_i32_0 : i32, i32
  }
  func.func @transform_3(%arg0: i32, %arg1: i32) -> (i32, i32) {
    %c0_i32 = arith.constant 0 : i32
    %c0_i32_0 = arith.constant 0 : i32
    %c0_i32_1 = arith.constant 0 : i32
    return %c0_i32, %c0_i32_0 : i32, i32
  }
  func.func @transform_4(%arg0: i32, %arg1: i32) -> (i32, i32) {
    %c0_i32 = arith.constant 0 : i32
    %c0_i32_0 = arith.constant 0 : i32
    %c0_i32_1 = arith.constant 0 : i32
    return %c0_i32, %c0_i32_0 : i32, i32
  }
  func.func @transform_5(%arg0: i32, %arg1: i32) -> (i32, i32) {
    %c0_i32 = arith.constant 0 : i32
    %c0_i32_0 = arith.constant 0 : i32
    %c0_i32_1 = arith.constant 0 : i32
    return %c0_i32, %c0_i32_0 : i32, i32
  }
  func.func @transform_6(%arg0: i32, %arg1: i32) -> (i32, i32) {
    %c0_i32 = arith.constant 0 : i32
    %c0_i32_0 = arith.constant 0 : i32
    %c0_i32_1 = arith.constant 0 : i32
    return %c0_i32, %c0_i32_0 : i32, i32
  }
  func.func @transform_7(%arg0: i32, %arg1: i32) -> (i32, i32) {
    %c0_i32 = arith.constant 0 : i32
    %c0_i32_0 = arith.constant 0 : i32
    %c0_i32_1 = arith.constant 0 : i32
    return %c0_i32, %c0_i32_0 : i32, i32
  }
  func.func @transform_8(%arg0: i32, %arg1: i32) -> (i32, i32) {
    %c0_i32 = arith.constant 0 : i32
    %c0_i32_0 = arith.constant 0 : i32
    %c0_i32_1 = arith.constant 0 : i32
    return %c0_i32, %c0_i32_0 : i32, i32
  }
  func.func @transform_9(%arg0: i32, %arg1: i32) -> (i32, i32, i32) {
    %c0_i32 = arith.constant 0 : i32
    %c0_i32_0 = arith.constant 0 : i32
    return %arg1, %arg0, %c0_i32 : i32, i32, i32
  }
  func.func @transform_10(%arg0: i32, %arg1: i32) -> (i32, i32) {
    %c0_i32 = arith.constant 0 : i32
    %c0_i32_0 = arith.constant 0 : i32
    return %arg0, %c0_i32 : i32, i32
  }
}

</mosaic_0001>

<bundles_post_ra>
// kernel: rnn_model_forward.1
= control target key start
LH: loop header
LB: loop body
LE: loop exit
PB: predicated region body
PF: predicated region fallthrough
CT: control target
= control target key end

     0   :  { %16 = vsyncpa [#allocation6], 0  ;;  %s3552_s0 = inlined_call_operand.vmem [shape: f32[8,8,1], index: 0, kind: input, shape index: {}]   ;;  %s3553_s1 = inlined_call_operand.vmem [shape: f32[8,128], index: 1, kind: input, shape index: {}]   ;;  %s3554_s2 = inlined_call_operand.vmem [shape: f32[1,384], index: 2, kind: input, shape index: {}]   ;;  %s3555_s3 = inlined_call_operand.hbm [shape: f32[128,256], index: 3, kind: input, shape index: {}]   ;;  %s3556_s4 = inlined_call_operand.hbm [shape: f32[128,128], index: 4, kind: input, shape index: {}]   ;;  %s3557_s5 = inlined_call_operand.vmem [shape: f32[1,384], index: 5, kind: input, shape index: {}]   ;;  %s3558_s6 = inlined_call_operand.vmem [shape: f32[1,128], index: 6, kind: input, shape index: {}]   ;;  %s3559_s7 = inlined_call_operand.vmem [shape: f32[128,128], index: 7, kind: input, shape index: {}]   ;;  %s3560_s8 = inlined_call_operand.vmem [shape: f32[1,128], index: 8, kind: input, shape index: {}]   ;;  %s3561_s9 = inlined_call_operand.vmem [shape: f32[8,8,128], index: 9, kind: output, shape index: {0}]   ;;  %s3562_s10 = inlined_call_operand.vmem [shape: f32[8,128], index: 10, kind: output, shape index: {1}]  }
   0x1   :  { %17 = vsyncpa [#allocation8], 0  ;;  %s2902_s13 = smov [#allocation5]   ;;  %s2854_s17 = scalar_lea.hbm %s3555_s3, 4096 }
   0x2   :  { %s29_s14 = sshll.u32 %s2902_s13, 4  ;;  %p2855_p0 = scmp.ne.s32.totalorder %s3555_s3, %s2854_s17  ;;  %s30_s14 = int_to_ptr.vmem [resolvable:$true] %s29_s14 }
   0x3   :  { %p2858_p1 = scmp.lt.u32.totalorder %s2854_s17, %s3555_s3 }
   0x5   :  { %p2860_p2 = pnand %p2858_p1, %p2855_p0 }
   0x7   :  { %2863 = shalt.err (!%p2860_p2)
}
   0x8   :  { %s2864_s22 = scalar_lea.vmem %s30_s14, 4096  ;;  %p2869_p4 = scmp.lt.s32.totalorder %s30_s14, %s30_s14 }
   0x9   :  { %p2865_p3 = scmp.ne.s32.totalorder %s30_s14, %s2864_s22  ;;  %p2870_p5 = scmp.lt.s32.totalorder %s2864_s22, %s2864_s22 }
   0xb   :  { %p2871_p6 = por %p2870_p5, %p2869_p4 }
   0xd   :  { %p2872_p7 = pnand %p2871_p6, %p2865_p3 }
   0xf   :  { %2875 = shalt.err (!%p2872_p7)
}
  0x10   :  { %s2903_s23 = smov 256   ;;  %s2904_s24 = smov 16  }
  0x11   :  { %35 = dma.hbm_to_vmem [thread:$0]  %s3555_s3, 4096, %s30_s14, [#allocation6], %s2903_s23, %s2903_s23, %s2904_s24  }
  0x12   :  { %s2905_s27 = smov [#allocation7]   ;;  %s2876_s11 = scalar_lea.hbm %s3556_s4, 2048 }
  0x13   :  { %s41_s28 = sshll.u32 %s2905_s27, 4  ;;  %p2877_p8 = scmp.ne.s32.totalorder %s3556_s4, %s2876_s11  ;;  %s42_s28 = int_to_ptr.vmem [resolvable:$true] %s41_s28 }
  0x14   :  { %p2880_p9 = scmp.lt.u32.totalorder %s2876_s11, %s3556_s4 }
  0x16   :  { %p2882_p10 = pnand %p2880_p9, %p2877_p8 }
  0x18   :  { %2885 = shalt.err (!%p2882_p10)
}
  0x19   :  { %s2886_s17 = scalar_lea.vmem %s42_s28, 2048  ;;  %p2891_p12 = scmp.lt.s32.totalorder %s42_s28, %s42_s28 }
  0x1a   :  { %p2887_p11 = scmp.ne.s32.totalorder %s42_s28, %s2886_s17  ;;  %p2892_p13 = scmp.lt.s32.totalorder %s2886_s17, %s2886_s17 }
  0x1c   :  { %p2893_p0 = por %p2892_p13, %p2891_p12 }
  0x1e   :  { %p2894_p1 = pnand %p2893_p0, %p2887_p11 }
  0x20   :  { %2897 = shalt.err (!%p2894_p1)
}
  0x21   :  { %s2906_s3 = smov 128   ;;  %s2907_s14 = smov 8  }
  0x22   :  { %47 = dma.hbm_to_vmem [thread:$0]  %s3556_s4, 2048, %s42_s28, [#allocation8], %s2906_s3, %s2906_s3, %s2907_s14  }
  0x23   :  { %2898 = dma.done.wait [#allocation6], 4096  }
  0x24   :  { %2899 = vsyncadd [#allocation6], 4294963200 }
  0x25   :  { %2900 = dma.done.wait [#allocation8], 2048  }
  0x26   :  { %2901 = vsyncadd [#allocation8], 4294965248  ;;  %v2908_v0 = vmov 0.0   ;;  %v2909_v1 = vmov 0   ;;  %v223_v2 = vld [vmem:[#allocation5 + $0x8] sm:$0xff]  ;;  %v225_v3 = vld [vmem:[#allocation5 + $0x18] sm:$0xff] }
  0x27   :  { %345 = vmatprep.mubr.f32.mxu1 %v2908_v0  ;;  %2771 = vset.pattern.permute.xlu0 %v2909_v1  ;;  %v222_v4 = vld [vmem:[#allocation5] sm:$0xff]  ;;  %v2993_v5 = vpack.c.bf16 %v225_v3, %v223_v2  ;;  %v224_v6 = vld [vmem:[#allocation5 + $0x10] sm:$0xff]  ;;  %v227_v7 = vld [vmem:[#allocation5 + $0x28] sm:$0xff]  ;;  %v2910_v58 = vmov 0.0|0.0   ;;  %vm2911_vm0 = vmmov 0  }
  0x28   :  { %512 = vmatprep.mubr.f32.mxu0 %v2908_v0  ;;  %2772 = vset.pattern.permute.xlu1 %v2909_v1  ;;  %v229_v8 = vld [vmem:[#allocation5 + $0x38] sm:$0xff]  ;;  %v2995_v9 = vpack.c.bf16 %v224_v6, %v222_v4  ;;  %v226_v11 = vld [vmem:[#allocation5 + $0x20] sm:$0xff]  ;;  %v228_v12 = vld [vmem:[#allocation5 + $0x30] sm:$0xff] }
  0x29   :  { %v2997_v10 = vpack.c.bf16 %v229_v8, %v227_v7  ;;  %v231_v13 = vld [vmem:[#allocation5 + $0x48] sm:$0xff]  ;;  %2282 = vmatprep.subr.bf16.mxu1 %v2993_v5  ;;  %v233_v14 = vld [vmem:[#allocation5 + $0x58] sm:$0xff]  ;;  %2338 = vmatprep.subr.bf16.mxu0 %v2993_v5  ;;  %v3002_v15 = vpack.c.bf16 %v228_v12, %v226_v11  ;;  %v230_v17 = vld [vmem:[#allocation5 + $0x40] sm:$0xff] }
  0x2a   :  { %2284 = vmatpush1.bf16.msra.mxu1 %v2995_v9  ;;  %2340 = vmatpush1.bf16.msra.mxu0 %v2995_v9  ;;  %v3006_v16 = vpack.c.bf16 %v233_v14, %v231_v13  ;;  %v232_v18 = vld [vmem:[#allocation5 + $0x50] sm:$0xff]  ;;  %v235_v19 = vld [vmem:[#allocation5 + $0x68] sm:$0xff]  ;;  %v237_v20 = vld [vmem:[#allocation5 + $0x78] sm:$0xff] }
  0x2b   :  { %2286 = vmatprep.subr.bf16.mxu1 %v2997_v10  ;;  %2342 = vmatprep.subr.bf16.mxu0 %v2997_v10  ;;  %v3010_v21 = vpack.c.bf16 %v232_v18, %v230_v17  ;;  %v3014_v22 = vpack.c.bf16 %v237_v20, %v235_v19  ;;  %v234_v23 = vld [vmem:[#allocation5 + $0x60] sm:$0xff]  ;;  %v236_v24 = vld [vmem:[#allocation5 + $0x70] sm:$0xff]  ;;  %v239_v25 = vld [vmem:[#allocation5 + $0x88] sm:$0xff] }
  0x2c   :  { %v241_v26 = vld [vmem:[#allocation5 + $0x98] sm:$0xff]  ;;  %v3018_v27 = vpack.c.bf16 %v236_v24, %v234_v23  ;;  %v238_v29 = vld [vmem:[#allocation5 + $0x80] sm:$0xff]  ;;  %v240_v30 = vld [vmem:[#allocation5 + $0x90] sm:$0xff]  ;;  %v119_v24 = vlaneseq }
  0x2d   :  { %v3022_v28 = vpack.c.bf16 %v241_v26, %v239_v25  ;;  %v243_v31 = vld [vmem:[#allocation5 + $0xa8] sm:$0xff]  ;;  %v245_v32 = vld [vmem:[#allocation5 + $0xb8] sm:$0xff]  ;;  %v3026_v33 = vpack.c.bf16 %v240_v30, %v238_v29  ;;  %v69_v34 = vld [vmem:[%s3552_s0] sm:$0xff] }
  0x2e   :  { %2288 = vmatpush1.bf16.msra.mxu1 %v3002_v15  ;;  %2344 = vmatpush1.bf16.msra.mxu0 %v3002_v15  ;;  %v3033_v35 = vpack.c.bf16 %v245_v32, %v243_v31  ;;  %v242_v36 = vld [vmem:[#allocation5 + $0xa0] sm:$0xff]  ;;  %v244_v37 = vld [vmem:[#allocation5 + $0xb0] sm:$0xff]  ;;  %v247_v38 = vld [vmem:[#allocation5 + $0xc8] sm:$0xff]  ;;  %v120_v25 = vshrl.u32 %v119_v24, 7 }
  0x2f   :  { %2290 = vmatprep.subr.bf16.mxu1 %v3006_v16  ;;  %2346 = vmatprep.subr.bf16.mxu0 %v3006_v16  ;;  %v249_v39 = vld [vmem:[#allocation5 + $0xd8] sm:$0xff]  ;;  %v70_v40 = vld [vmem:[%s3552_s0 + $0x8] sm:$0xff]  ;;  %v3040_v41 = vpack.c.bf16 %v244_v37, %v242_v36  ;;  %v246_v43 = vld [vmem:[#allocation5 + $0xc0] sm:$0xff] }
  0x30   :  { %80 = vperm.xlu0 %2771, %v69_v34   ;;  %v3044_v42 = vpack.c.bf16 %v249_v39, %v247_v38  ;;  %v248_v44 = vld [vmem:[#allocation5 + $0xd0] sm:$0xff]  ;;  %v251_v45 = vld [vmem:[#allocation5 + $0xe8] sm:$0xff]  ;;  %v253_v46 = vld [vmem:[#allocation5 + $0xf8] sm:$0xff]  ;;  %v121_v26 = vsub.s32 0, %v120_v25  ;;  %v125_v37 = vsub.s32 1, %v120_v25 }
  0x31   :  { %v73_v47 = vld [vmem:[%s3552_s0 + $0x20] sm:$0xff]  ;;  %v3051_v48 = vpack.c.bf16 %v248_v44, %v246_v43  ;;  %v3055_v49 = vpack.c.bf16 %v253_v46, %v251_v45  ;;  %v252_v51 = vld [vmem:[#allocation5 + $0xf0] sm:$0xff]  ;;  %v255_v55 = vld [vmem:[#allocation7 + $0x8] sm:$0xff] }
  0x32   :  { %2292 = vmatpush1.bf16.msra.mxu1 %v3010_v21  ;;  %2348 = vmatpush1.bf16.msra.mxu0 %v3010_v21  ;;  %v250_v50 = vld [vmem:[#allocation5 + $0xe0] sm:$0xff]  ;;  %v75_v52 = vld [vmem:[%s3552_s0 + $0x30] sm:$0xff]  ;;  %v257_v60 = vld [vmem:[#allocation7 + $0x18] sm:$0xff] }
  0x33   :  { %2294 = vmatprep.subr.bf16.mxu1 %v3014_v22  ;;  %2350 = vmatprep.subr.bf16.mxu0 %v3014_v22  ;;  %v3062_v53 = vpack.c.bf16 %v252_v51, %v250_v50  ;;  %v254_v54 = vld [vmem:[#allocation7] sm:$0xff]  ;;  %v256_v59 = vld [vmem:[#allocation7 + $0x10] sm:$0xff]  ;;  %v259_v63 = vld [vmem:[#allocation7 + $0x28] sm:$0xff] }
  0x34   :  { %85 = vperm.xlu0 %2771, %v70_v40   ;;  %v3071_v56 = vld [vmem:[%s3553_s1] sm:$0xff]  ;;  %v3073_v57 = vpack.c.bf16 %v255_v55, %v254_v54  ;;  %v3080_v61 = vpack.c.bf16 %v257_v60, %v256_v59  ;;  %v260_v2 = vld [vmem:[#allocation7 + $0x30] sm:$0xff]  ;;  %v261_v3 = vld [vmem:[#allocation7 + $0x38] sm:$0xff]  ;;  %v129_v59 = vsub.s32 2, %v120_v25 }
  0x35   :  { %v258_v62 = vld [vmem:[#allocation7 + $0x20] sm:$0xff]  ;;  %v3090_v4 = vpack.c.bf16 %v261_v3, %v260_v2  ;;  %v263_v7 = vld [vmem:[#allocation7 + $0x48] sm:$0xff]  ;;  %v264_v11 = vld [vmem:[#allocation7 + $0x50] sm:$0xff] }
  0x36   :  { %2296 = vmatpush1.bf16.msra.mxu1 %v3018_v27  ;;  %2352 = vmatpush1.bf16.msra.mxu0 %v3018_v27  ;;  %v3086_v1 = vpack.c.bf16 %v259_v63, %v258_v62  ;;  %v262_v6 = vld [vmem:[#allocation7 + $0x40] sm:$0xff]  ;;  %v265_v12 = vld [vmem:[#allocation7 + $0x58] sm:$0xff]  ;;  %v267_v17 = vld [vmem:[#allocation7 + $0x68] sm:$0xff] }
  0x37   :  { %2298 = vmatprep.subr.bf16.mxu1 %v3022_v28  ;;  %2354 = vmatprep.subr.bf16.mxu0 %v3022_v28  ;;  %v3094_v8 = vpack.c.bf16 %v263_v7, %v262_v6  ;;  %v3098_v13 = vpack.c.bf16 %v265_v12, %v264_v11  ;;  %v266_v14 = vld [vmem:[#allocation7 + $0x60] sm:$0xff]  ;;  %v268_v19 = vld [vmem:[#allocation7 + $0x70] sm:$0xff]  ;;  %v269_v20 = vld [vmem:[#allocation7 + $0x78] sm:$0xff] }
  0x38   :  { %100 = vperm.xlu0 %2771, %v73_v47   ;;  %v3102_v18 = vpack.c.bf16 %v267_v17, %v266_v14  ;;  %v3106_v23 = vpack.c.bf16 %v269_v20, %v268_v19  ;;  %v77_v29 = vld [vmem:[%s3554_s2] sm:$0x7] }
  0x39   :  { %v3133_v30 = vrot.slane %v77_v29, %v121_v26  ;;  %v68_v31 = vld [vmem:[%s3557_s5] sm:$0x7]  ;;  %v3142_v39 = vrot.slane %v77_v29, %v125_v37  ;;  %v3148_v60 = vrot.slane %v77_v29, %v129_v59 }
  0x3a   :  { %2300 = vmatpush1.bf16.msra.mxu1 %v3026_v33  ;;  %2356 = vmatpush1.bf16.msra.mxu0 %v3026_v33  ;;  %v3139_v36 = vrot.slane %v68_v31, %v121_v26  ;;  %v3145_v46 = vrot.slane %v68_v31, %v125_v37  ;;  %v3153_v63 = vld [vmem:[%s3558_s6] ss:$0 sm:$0xff]  ;;  %v3156_v3 = vrot.slane %v68_v31, %v129_v59  ;;  %v74_v37 = vld [vmem:[%s3552_s0 + $0x28] sm:$0xff] }
  0x3b   :  { %2302 = vmatprep.subr.bf16.mxu1 %v3033_v35  ;;  %2358 = vmatprep.subr.bf16.mxu0 %v3033_v35 }
  0x3c   :  { %110 = vperm.xlu0 %2771, %v75_v52  }
  0x3e   :  { %2304 = vmatpush1.bf16.msra.mxu1 %v3040_v41  ;;  %2360 = vmatpush1.bf16.msra.mxu0 %v3040_v41 }
  0x3f   :  { %2306 = vmatprep.subr.bf16.mxu1 %v3044_v42  ;;  %2362 = vmatprep.subr.bf16.mxu0 %v3044_v42 }
  0x42   :  { %2308 = vmatpush1.bf16.msra.mxu1 %v3051_v48  ;;  %2364 = vmatpush1.bf16.msra.mxu0 %v3051_v48 }
  0x43   :  { %2310 = vmatprep.subr.bf16.mxu1 %v3055_v49  ;;  %2366 = vmatprep.subr.bf16.mxu0 %v3055_v49 }
  0x46   :  { %2312 = vmatpush1.bf16.msra.mxu1 %v3062_v53  ;;  %2368 = vmatpush1.bf16.msra.mxu0 %v3062_v53 }
  0x47   :  { %2313 = vmatprep.subr.bf16.mxu1 %v2910_v58  ;;  %2394 = vmatprep.subr.bf16.mxu0 %v2993_v5 }
  0x49   :  { %346 = vmatmul.mubr.f32.vlgmr.msra.gmra.mrb[0].mxu1 %v3071_v56 }
  0x4a   :  { %2315 = vmatpush3.bf16.msra.mxu1 %v3073_v57  ;;  %1989 = vmatprep.mubr.msk.f32.mxu1 %vm2911_vm0, %v2908_v0 }
  0x4b   :  { %2316 = vmatprep.subr.bf16.mxu1 %v2910_v58 }
  0x4e   :  { %2318 = vmatpush3.bf16.msra.mxu1 %v3080_v61 }
  0x4f   :  { %2319 = vmatprep.subr.bf16.mxu1 %v2910_v58 }
  0x52   :  { %2321 = vmatpush3.bf16.msra.mxu1 %v3086_v1 }
  0x53   :  { %2322 = vmatprep.subr.bf16.mxu1 %v2910_v58 }
  0x56   :  { %2324 = vmatpush3.bf16.msra.mxu1 %v3090_v4 }
  0x57   :  { %2325 = vmatprep.subr.bf16.mxu1 %v2910_v58 }
  0x5a   :  { %2327 = vmatpush3.bf16.msra.mxu1 %v3094_v8 }
  0x5b   :  { %2328 = vmatprep.subr.bf16.mxu1 %v2910_v58 }
  0x5e   :  { %2330 = vmatpush3.bf16.msra.mxu1 %v3098_v13 }
  0x5f   :  { %2331 = vmatprep.subr.bf16.mxu1 %v2910_v58 }
  0x62   :  { %2333 = vmatpush3.bf16.msra.mxu1 %v3102_v18 }
  0x63   :  { %2334 = vmatprep.subr.bf16.mxu1 %v2910_v58 }
  0x66   :  { %2336 = vmatpush3.bf16.msra.mxu1 %v3106_v23 }
  0x67   :  { %2369 = vmatprep.subr.bf16.mxu1 %v2910_v58 }
  0x69   :  { %1990 = vmatmul.mubr.f32.vlgmr.msra.gmra.mrb[2].mxu1 %v3071_v56 }
  0x6a   :  { %2371 = vmatpush3.bf16.msra.mxu1 %v3073_v57  ;;  %2024 = vmatprep.mubr.msk.f32.mxu1 %vm2911_vm0, %v2908_v0 }
  0x6b   :  { %2372 = vmatprep.subr.bf16.mxu1 %v2910_v58 }
  0x6e   :  { %2374 = vmatpush3.bf16.msra.mxu1 %v3080_v61 }
  0x6f   :  { %2375 = vmatprep.subr.bf16.mxu1 %v2910_v58 }
  0x72   :  { %2377 = vmatpush3.bf16.msra.mxu1 %v3086_v1 }
  0x73   :  { %2378 = vmatprep.subr.bf16.mxu1 %v2910_v58 }
  0x76   :  { %2380 = vmatpush3.bf16.msra.mxu1 %v3090_v4 }
  0x77   :  { %2381 = vmatprep.subr.bf16.mxu1 %v2910_v58 }
  0x7a   :  { %2383 = vmatpush3.bf16.msra.mxu1 %v3094_v8 }
  0x7b   :  { %2384 = vmatprep.subr.bf16.mxu1 %v2910_v58 }
  0x7e   :  { %2386 = vmatpush3.bf16.msra.mxu1 %v3098_v13 }
  0x7f   :  { %2387 = vmatprep.subr.bf16.mxu1 %v2910_v58 }
  0x82   :  { %2389 = vmatpush3.bf16.msra.mxu1 %v3102_v18 }
  0x83   :  { %2390 = vmatprep.subr.bf16.mxu1 %v2910_v58 }
  0x86   :  { %2392 = vmatpush3.bf16.msra.mxu1 %v3106_v23 }
  0x87   :  { %2425 = vmatprep.subr.bf16.mxu1 %v2910_v58 }
  0xaf   :  { %v81_v32 = vpop.permute.xlu0 %80 }
  0xb0   :  { %v134_v34 = vmul.f32 %v3133_v30, %v81_v32  ;;  %v135_v45 = vmul.f32 %v3142_v39, %v81_v32  ;;  %v136_v2 = vmul.f32 %v3148_v60, %v81_v32 }
  0xb2   :  { %v174_v38 = vadd.f32 %v3139_v36, %v134_v34  ;;  %v175_v50 = vadd.f32 %v3145_v46, %v135_v45  ;;  %v176_v17 = vadd.f32 %v3156_v3, %v136_v2  ;;  %v72_v34 = vld [vmem:[%s3552_s0 + $0x18] sm:$0xff] }
 0x11c   :  { %v347_v40 = vpop.f32.mrb[0].mxu1 }
 0x11d   :  { %v352_v43 = vadd.f32 %v347_v40, %v174_v38  ;;  %v349_v44 = vpop.f32.mrb[1].mxu1  ;;  %v76_v38 = vld [vmem:[%s3552_s0 + $0x38] sm:$0xff]  ;;  %v86_v40 = vpop.permute.xlu0 %85 }
 0x11e   :  { %v359_v51 = vadd.f32 %v349_v44, %v175_v50  ;;  %v138_v44 = vmul.f32 %v3142_v39, %v86_v40 }
 0x11f   :  { %v1780_v47 = vmul.f32 -1.442695, %v352_v43  ;;  %v137_v43 = vmul.f32 %v3133_v30, %v86_v40 }
 0x120   :  { %v1781_v52 = vmul.f32 -1.442695, %v359_v51 }
 0x121   :  { %2773 = vpow2.f32 %v1780_v47  ;;  %v177_v45 = vadd.f32 %v3139_v36, %v137_v43 }
 0x122   :  { %2775 = vpow2.f32 %v1781_v52 }
 0x12b   :  { %v2774_v54 = vpop.eup %2773 }
 0x12c   :  { %v356_v55 = vadd.f32 1.0, %v2774_v54  ;;  %v2776_v62 = vpop.eup %2775 }
 0x12d   :  { %v363_v6 = vadd.f32 1.0, %v2776_v62 }
 0x12e   :  { %2777 = vrcp.f32 %v356_v55  ;;  %v178_v55 = vadd.f32 %v3145_v46, %v138_v44 }
 0x12f   :  { %2779 = vrcp.f32 %v363_v6 }
 0x138   :  { %v2778_v14 = vpop.eup %2777 }
 0x139   :  { %v2780_v24 = vpop.eup %2779 }
 0x13a   :  { %v439_v25 = vsub.f32 1.0, %v2780_v24  ;;  %v441_v32 = vmul.f32 %v2780_v24, %v3071_v56  ;;  %v71_v56 = vld [vmem:[%s3552_s0 + $0x10] sm:$0xff] }
 0x13b   :  { %90 = vperm.xlu1 %2772, %v71_v56  }
 0x13c   :  { %v432_v7 = vpop.f32.mrb[2].mxu1 }
 0x13d   :  { %v433_v11 = vadd.f32 %v3153_v63, %v432_v7  ;;  %v1991_v12 = vpop.f32.mrb[3].mxu1 }
 0x13e   :  { %v139_v12 = vmul.f32 %v3148_v60, %v86_v40 }
 0x13f   :  { %v436_v19 = vmul.f32 %v2778_v14, %v433_v11  ;;  %95 = vperm.xlu1 %2772, %v72_v34  }
 0x141   :  { %v437_v20 = vadd.f32 %v436_v19, %v176_v17 }
 0x143   :  { %2781 = vtanh.f32 %v437_v20  ;;  %105 = vperm.xlu1 %2772, %v74_v37   ;;  %v179_v20 = vadd.f32 %v3156_v3, %v139_v12 }
 0x147   :  { %115 = vperm.xlu1 %2772, %v76_v38  }
 0x14d   :  { %v2782_v26 = vpop.eup %2781 }
 0x14e   :  { %v440_v29 = vmul.f32 %v2782_v26, %v439_v25 }
 0x150   :  { %v3161_v31 = vadd.f32 %v441_v32, %v440_v29 }
 0x152   :  { %513 = vmatmul.mubr.f32.vlgmr.msra.gmra.mrb[0].mxu0 %v3161_v31  ;;  %2025 = vmatmul.mubr.f32.vlgmr.msra.gmra.mrb[4].mxu1 %v3161_v31 }
 0x153   :  { %2396 = vmatpush1.bf16.msra.mxu0 %v2995_v9  ;;  %2427 = vmatpush3.bf16.msra.mxu1 %v3073_v57 }
 0x154   :  { %2398 = vmatprep.subr.bf16.mxu0 %v2997_v10  ;;  %2428 = vmatprep.subr.bf16.mxu1 %v2910_v58 }
 0x155   :  { %680 = vmatprep.mubr.f32.mxu0 %v2908_v0  ;;  %2059 = vmatprep.mubr.msk.f32.mxu1 %vm2911_vm0, %v2908_v0 }
 0x157   :  { %2400 = vmatpush1.bf16.msra.mxu0 %v3002_v15  ;;  %2430 = vmatpush3.bf16.msra.mxu1 %v3080_v61 }
 0x158   :  { %2402 = vmatprep.subr.bf16.mxu0 %v3006_v16  ;;  %2431 = vmatprep.subr.bf16.mxu1 %v2910_v58 }
 0x15b   :  { %2404 = vmatpush1.bf16.msra.mxu0 %v3010_v21  ;;  %2433 = vmatpush3.bf16.msra.mxu1 %v3086_v1 }
 0x15c   :  { %2406 = vmatprep.subr.bf16.mxu0 %v3014_v22  ;;  %2434 = vmatprep.subr.bf16.mxu1 %v2910_v58 }
 0x15f   :  { %2408 = vmatpush1.bf16.msra.mxu0 %v3018_v27  ;;  %2436 = vmatpush3.bf16.msra.mxu1 %v3090_v4 }
 0x160   :  { %2410 = vmatprep.subr.bf16.mxu0 %v3022_v28  ;;  %2437 = vmatprep.subr.bf16.mxu1 %v2910_v58 }
 0x163   :  { %2412 = vmatpush1.bf16.msra.mxu0 %v3026_v33  ;;  %2439 = vmatpush3.bf16.msra.mxu1 %v3094_v8 }
 0x164   :  { %2414 = vmatprep.subr.bf16.mxu0 %v3033_v35  ;;  %2440 = vmatprep.subr.bf16.mxu1 %v2910_v58 }
 0x167   :  { %2416 = vmatpush1.bf16.msra.mxu0 %v3040_v41  ;;  %2442 = vmatpush3.bf16.msra.mxu1 %v3098_v13 }
 0x168   :  { %2418 = vmatprep.subr.bf16.mxu0 %v3044_v42  ;;  %2443 = vmatprep.subr.bf16.mxu1 %v2910_v58 }
 0x16b   :  { %2420 = vmatpush1.bf16.msra.mxu0 %v3051_v48  ;;  %2445 = vmatpush3.bf16.msra.mxu1 %v3102_v18 }
 0x16c   :  { %2422 = vmatprep.subr.bf16.mxu0 %v3055_v49  ;;  %2446 = vmatprep.subr.bf16.mxu1 %v2910_v58 }
 0x16f   :  { %2424 = vmatpush1.bf16.msra.mxu0 %v3062_v53  ;;  %2448 = vmatpush3.bf16.msra.mxu1 %v3106_v23 }
 0x170   :  { %2450 = vmatprep.subr.bf16.mxu0 %v2993_v5  ;;  %2481 = vmatprep.subr.bf16.mxu1 %v2910_v58 }
 0x1ba   :  { %v91_v38 = vpop.permute.xlu1 %90 }
 0x1bb   :  { %v140_v40 = vmul.f32 %v3133_v30, %v91_v38  ;;  %v141_v43 = vmul.f32 %v3142_v39, %v91_v38 }
 0x1bd   :  { %v180_v44 = vadd.f32 %v3139_v36, %v140_v40 }
 0x225   :  { %v514_v47 = vpop.f32.mrb[0].mxu0  ;;  %v599_v50 = vpop.f32.mrb[4].mxu1 }
 0x226   :  { %v519_v51 = vadd.f32 %v514_v47, %v177_v45  ;;  %v516_v52 = vpop.f32.mrb[1].mxu0  ;;  %v2026_v54 = vpop.f32.mrb[5].mxu1  ;;  %v600_v17 = vadd.f32 %v3153_v63, %v599_v50  ;;  %v181_v50 = vadd.f32 %v3145_v46, %v141_v43 }
 0x227   :  { %v526_v62 = vadd.f32 %v516_v52, %v178_v55 }
 0x228   :  { %v1782_v59 = vmul.f32 -1.442695, %v519_v51 }
 0x229   :  { %v1783_v2 = vmul.f32 -1.442695, %v526_v62 }
 0x22a   :  { %2783 = vpow2.f32 %v1782_v59 }
 0x22b   :  { %2785 = vpow2.f32 %v1783_v2 }
 0x234   :  { %v2784_v6 = vpop.eup %2783 }
 0x235   :  { %v523_v7 = vadd.f32 1.0, %v2784_v6  ;;  %v2786_v11 = vpop.eup %2785 }
 0x236   :  { %v530_v14 = vadd.f32 1.0, %v2786_v11  ;;  %v142_v11 = vmul.f32 %v3148_v60, %v91_v38  ;;  %v96_v38 = vpop.permute.xlu1 %95 }
 0x237   :  { %2787 = vrcp.f32 %v523_v7  ;;  %v143_v40 = vmul.f32 %v3133_v30, %v96_v38  ;;  %v144_v43 = vmul.f32 %v3142_v39, %v96_v38 }
 0x238   :  { %2789 = vrcp.f32 %v530_v14 }
 0x241   :  { %v2788_v19 = vpop.eup %2787 }
 0x242   :  { %v603_v24 = vmul.f32 %v2788_v19, %v600_v17  ;;  %v2790_v26 = vpop.eup %2789  ;;  %v182_v19 = vadd.f32 %v3156_v3, %v142_v11  ;;  %v145_v11 = vmul.f32 %v3148_v60, %v96_v38  ;;  %v101_v38 = vpop.permute.xlu0 %100 }
 0x243   :  { %v606_v29 = vsub.f32 1.0, %v2790_v26  ;;  %v608_v34 = vmul.f32 %v2790_v26, %v3161_v31 }
 0x244   :  { %v604_v25 = vadd.f32 %v603_v24, %v179_v20 }
 0x246   :  { %2791 = vtanh.f32 %v604_v25 }
 0x250   :  { %v2792_v32 = vpop.eup %2791 }
 0x251   :  { %v607_v56 = vmul.f32 %v2792_v32, %v606_v29 }
 0x253   :  { %v3220_v37 = vadd.f32 %v608_v34, %v607_v56 }
 0x255   :  { %681 = vmatmul.mubr.f32.vlgmr.msra.gmra.mrb[2].mxu0 %v3220_v37  ;;  %2060 = vmatmul.mubr.f32.vlgmr.msra.gmra.mrb[6].mxu1 %v3220_v37 }
 0x256   :  { %2452 = vmatpush1.bf16.msra.mxu0 %v2995_v9  ;;  %2483 = vmatpush3.bf16.msra.mxu1 %v3073_v57 }
 0x257   :  { %2454 = vmatprep.subr.bf16.mxu0 %v2997_v10  ;;  %2484 = vmatprep.subr.bf16.mxu1 %v2910_v58 }
 0x258   :  { %848 = vmatprep.mubr.f32.mxu0 %v2908_v0  ;;  %2094 = vmatprep.mubr.msk.f32.mxu1 %vm2911_vm0, %v2908_v0 }
 0x25a   :  { %2456 = vmatpush1.bf16.msra.mxu0 %v3002_v15  ;;  %2486 = vmatpush3.bf16.msra.mxu1 %v3080_v61 }
 0x25b   :  { %2458 = vmatprep.subr.bf16.mxu0 %v3006_v16  ;;  %2487 = vmatprep.subr.bf16.mxu1 %v2910_v58 }
 0x25e   :  { %2460 = vmatpush1.bf16.msra.mxu0 %v3010_v21  ;;  %2489 = vmatpush3.bf16.msra.mxu1 %v3086_v1 }
 0x25f   :  { %2462 = vmatprep.subr.bf16.mxu0 %v3014_v22  ;;  %2490 = vmatprep.subr.bf16.mxu1 %v2910_v58 }
 0x262   :  { %2464 = vmatpush1.bf16.msra.mxu0 %v3018_v27  ;;  %2492 = vmatpush3.bf16.msra.mxu1 %v3090_v4 }
 0x263   :  { %2466 = vmatprep.subr.bf16.mxu0 %v3022_v28  ;;  %2493 = vmatprep.subr.bf16.mxu1 %v2910_v58 }
 0x266   :  { %2468 = vmatpush1.bf16.msra.mxu0 %v3026_v33  ;;  %2495 = vmatpush3.bf16.msra.mxu1 %v3094_v8 }
 0x267   :  { %2470 = vmatprep.subr.bf16.mxu0 %v3033_v35  ;;  %2496 = vmatprep.subr.bf16.mxu1 %v2910_v58 }
 0x26a   :  { %2472 = vmatpush1.bf16.msra.mxu0 %v3040_v41  ;;  %2498 = vmatpush3.bf16.msra.mxu1 %v3098_v13 }
 0x26b   :  { %2474 = vmatprep.subr.bf16.mxu0 %v3044_v42  ;;  %2499 = vmatprep.subr.bf16.mxu1 %v2910_v58 }
 0x26e   :  { %2476 = vmatpush1.bf16.msra.mxu0 %v3051_v48  ;;  %2501 = vmatpush3.bf16.msra.mxu1 %v3102_v18 }
 0x26f   :  { %2478 = vmatprep.subr.bf16.mxu0 %v3055_v49  ;;  %2502 = vmatprep.subr.bf16.mxu1 %v2910_v58 }
 0x272   :  { %2480 = vmatpush1.bf16.msra.mxu0 %v3062_v53  ;;  %2504 = vmatpush3.bf16.msra.mxu1 %v3106_v23 }
 0x273   :  { %2506 = vmatprep.subr.bf16.mxu0 %v2993_v5  ;;  %2537 = vmatprep.subr.bf16.mxu1 %v2910_v58 }
 0x328   :  { %v682_v45 = vpop.f32.mrb[2].mxu0  ;;  %v767_v47 = vpop.f32.mrb[6].mxu1 }
 0x329   :  { %v687_v51 = vadd.f32 %v682_v45, %v180_v44  ;;  %v684_v52 = vpop.f32.mrb[3].mxu0  ;;  %v2061_v54 = vpop.f32.mrb[7].mxu1  ;;  %v768_v14 = vadd.f32 %v3153_v63, %v767_v47  ;;  %v183_v44 = vadd.f32 %v3139_v36, %v143_v40 }
 0x32a   :  { %v694_v59 = vadd.f32 %v684_v52, %v181_v50  ;;  %v184_v54 = vadd.f32 %v3145_v46, %v144_v43  ;;  %v146_v43 = vmul.f32 %v3133_v30, %v101_v38 }
 0x32b   :  { %v1784_v55 = vmul.f32 -1.442695, %v687_v51 }
 0x32c   :  { %v1785_v62 = vmul.f32 -1.442695, %v694_v59 }
 0x32d   :  { %2793 = vpow2.f32 %v1784_v55 }
 0x32e   :  { %2795 = vpow2.f32 %v1785_v62 }
 0x337   :  { %v2794_v2 = vpop.eup %2793 }
 0x338   :  { %v691_v6 = vadd.f32 1.0, %v2794_v2  ;;  %v2796_v7 = vpop.eup %2795 }
 0x339   :  { %v698_v12 = vadd.f32 1.0, %v2796_v7 }
 0x33a   :  { %2797 = vrcp.f32 %v691_v6 }
 0x33b   :  { %2799 = vrcp.f32 %v698_v12 }
 0x344   :  { %v2798_v17 = vpop.eup %2797 }
 0x345   :  { %v771_v20 = vmul.f32 %v2798_v17, %v768_v14  ;;  %v2800_v25 = vpop.eup %2799 }
 0x346   :  { %v774_v26 = vsub.f32 1.0, %v2800_v25  ;;  %v776_v56 = vmul.f32 %v2800_v25, %v3220_v37 }
 0x347   :  { %v772_v24 = vadd.f32 %v771_v20, %v182_v19  ;;  %v185_v19 = vadd.f32 %v3156_v3, %v145_v11 }
 0x349   :  { %2801 = vtanh.f32 %v772_v24 }
 0x353   :  { %v2802_v29 = vpop.eup %2801 }
 0x354   :  { %v775_v32 = vmul.f32 %v2802_v29, %v774_v26 }
 0x356   :  { %v3267_v34 = vadd.f32 %v776_v56, %v775_v32 }
 0x358   :  { %849 = vmatmul.mubr.f32.vlgmr.msra.gmra.mrb[4].mxu0 %v3267_v34  ;;  %2095 = vmatmul.mubr.f32.vlgmr.msra.gmra.mrb[8].mxu1 %v3267_v34 }
 0x359   :  { %2508 = vmatpush1.bf16.msra.mxu0 %v2995_v9  ;;  %2539 = vmatpush3.bf16.msra.mxu1 %v3073_v57 }
 0x35a   :  { %2510 = vmatprep.subr.bf16.mxu0 %v2997_v10  ;;  %2540 = vmatprep.subr.bf16.mxu1 %v2910_v58 }
 0x35b   :  { %1016 = vmatprep.mubr.f32.mxu0 %v2908_v0  ;;  %2129 = vmatprep.mubr.msk.f32.mxu1 %vm2911_vm0, %v2908_v0 }
 0x35d   :  { %2512 = vmatpush1.bf16.msra.mxu0 %v3002_v15  ;;  %2542 = vmatpush3.bf16.msra.mxu1 %v3080_v61 }
 0x35e   :  { %2514 = vmatprep.subr.bf16.mxu0 %v3006_v16  ;;  %2543 = vmatprep.subr.bf16.mxu1 %v2910_v58 }
 0x361   :  { %2516 = vmatpush1.bf16.msra.mxu0 %v3010_v21  ;;  %2545 = vmatpush3.bf16.msra.mxu1 %v3086_v1 }
 0x362   :  { %2518 = vmatprep.subr.bf16.mxu0 %v3014_v22  ;;  %2546 = vmatprep.subr.bf16.mxu1 %v2910_v58 }
 0x365   :  { %2520 = vmatpush1.bf16.msra.mxu0 %v3018_v27  ;;  %2548 = vmatpush3.bf16.msra.mxu1 %v3090_v4 }
 0x366   :  { %2522 = vmatprep.subr.bf16.mxu0 %v3022_v28  ;;  %2549 = vmatprep.subr.bf16.mxu1 %v2910_v58 }
 0x369   :  { %2524 = vmatpush1.bf16.msra.mxu0 %v3026_v33  ;;  %2551 = vmatpush3.bf16.msra.mxu1 %v3094_v8 }
 0x36a   :  { %2526 = vmatprep.subr.bf16.mxu0 %v3033_v35  ;;  %2552 = vmatprep.subr.bf16.mxu1 %v2910_v58 }
 0x36d   :  { %2528 = vmatpush1.bf16.msra.mxu0 %v3040_v41  ;;  %2554 = vmatpush3.bf16.msra.mxu1 %v3098_v13 }
 0x36e   :  { %2530 = vmatprep.subr.bf16.mxu0 %v3044_v42  ;;  %2555 = vmatprep.subr.bf16.mxu1 %v2910_v58 }
 0x371   :  { %2532 = vmatpush1.bf16.msra.mxu0 %v3051_v48  ;;  %2557 = vmatpush3.bf16.msra.mxu1 %v3102_v18 }
 0x372   :  { %2534 = vmatprep.subr.bf16.mxu0 %v3055_v49  ;;  %2558 = vmatprep.subr.bf16.mxu1 %v2910_v58 }
 0x375   :  { %2536 = vmatpush1.bf16.msra.mxu0 %v3062_v53  ;;  %2560 = vmatpush3.bf16.msra.mxu1 %v3106_v23 }
 0x376   :  { %2562 = vmatprep.subr.bf16.mxu0 %v2993_v5  ;;  %2593 = vmatprep.subr.bf16.mxu1 %v2910_v58 }
 0x42b   :  { %v850_v45 = vpop.f32.mrb[4].mxu0  ;;  %v935_v47 = vpop.f32.mrb[8].mxu1 }
 0x42c   :  { %v855_v50 = vadd.f32 %v850_v45, %v183_v44  ;;  %v852_v51 = vpop.f32.mrb[5].mxu0  ;;  %v2096_v52 = vpop.f32.mrb[9].mxu1  ;;  %v936_v14 = vadd.f32 %v3153_v63, %v935_v47  ;;  %v147_v44 = vmul.f32 %v3142_v39, %v101_v38  ;;  %v186_v45 = vadd.f32 %v3139_v36, %v146_v43 }
 0x42d   :  { %v862_v59 = vadd.f32 %v852_v51, %v184_v54 }
 0x42e   :  { %v1786_v55 = vmul.f32 -1.442695, %v855_v50 }
 0x42f   :  { %v1787_v62 = vmul.f32 -1.442695, %v862_v59 }
 0x430   :  { %2803 = vpow2.f32 %v1786_v55  ;;  %v187_v55 = vadd.f32 %v3145_v46, %v147_v44 }
 0x431   :  { %2805 = vpow2.f32 %v1787_v62 }
 0x43a   :  { %v2804_v2 = vpop.eup %2803 }
 0x43b   :  { %v859_v6 = vadd.f32 1.0, %v2804_v2  ;;  %v2806_v7 = vpop.eup %2805 }
 0x43c   :  { %v866_v12 = vadd.f32 1.0, %v2806_v7 }
 0x43d   :  { %2807 = vrcp.f32 %v859_v6 }
 0x43e   :  { %2809 = vrcp.f32 %v866_v12  ;;  %v148_v12 = vmul.f32 %v3148_v60, %v101_v38  ;;  %v106_v38 = vpop.permute.xlu1 %105 }
 0x447   :  { %v2808_v17 = vpop.eup %2807 }
 0x448   :  { %v939_v20 = vmul.f32 %v2808_v17, %v936_v14  ;;  %v2810_v25 = vpop.eup %2809 }
 0x449   :  { %v942_v26 = vsub.f32 1.0, %v2810_v25  ;;  %v944_v56 = vmul.f32 %v2810_v25, %v3267_v34 }
 0x44a   :  { %v940_v24 = vadd.f32 %v939_v20, %v185_v19  ;;  %v188_v20 = vadd.f32 %v3156_v3, %v148_v12 }
 0x44c   :  { %2811 = vtanh.f32 %v940_v24 }
 0x456   :  { %v2812_v29 = vpop.eup %2811 }
 0x457   :  { %v943_v32 = vmul.f32 %v2812_v29, %v942_v26 }
 0x459   :  { %v3314_v40 = vadd.f32 %v944_v56, %v943_v32 }
 0x45b   :  { %1017 = vmatmul.mubr.f32.vlgmr.msra.gmra.mrb[6].mxu0 %v3314_v40  ;;  %2130 = vmatmul.mubr.f32.vlgmr.msra.gmra.mrb[10].mxu1 %v3314_v40 }
 0x45c   :  { %2564 = vmatpush1.bf16.msra.mxu0 %v2995_v9  ;;  %2595 = vmatpush3.bf16.msra.mxu1 %v3073_v57 }
 0x45d   :  { %2566 = vmatprep.subr.bf16.mxu0 %v2997_v10  ;;  %2596 = vmatprep.subr.bf16.mxu1 %v2910_v58 }
 0x45e   :  { %1184 = vmatprep.mubr.f32.mxu0 %v2908_v0  ;;  %2164 = vmatprep.mubr.msk.f32.mxu1 %vm2911_vm0, %v2908_v0 }
 0x460   :  { %2568 = vmatpush1.bf16.msra.mxu0 %v3002_v15  ;;  %2598 = vmatpush3.bf16.msra.mxu1 %v3080_v61 }
 0x461   :  { %2570 = vmatprep.subr.bf16.mxu0 %v3006_v16  ;;  %2599 = vmatprep.subr.bf16.mxu1 %v2910_v58 }
 0x464   :  { %2572 = vmatpush1.bf16.msra.mxu0 %v3010_v21  ;;  %2601 = vmatpush3.bf16.msra.mxu1 %v3086_v1 }
 0x465   :  { %2574 = vmatprep.subr.bf16.mxu0 %v3014_v22  ;;  %2602 = vmatprep.subr.bf16.mxu1 %v2910_v58 }
 0x468   :  { %2576 = vmatpush1.bf16.msra.mxu0 %v3018_v27  ;;  %2604 = vmatpush3.bf16.msra.mxu1 %v3090_v4 }
 0x469   :  { %2578 = vmatprep.subr.bf16.mxu0 %v3022_v28  ;;  %2605 = vmatprep.subr.bf16.mxu1 %v2910_v58 }
 0x46c   :  { %2580 = vmatpush1.bf16.msra.mxu0 %v3026_v33  ;;  %2607 = vmatpush3.bf16.msra.mxu1 %v3094_v8 }
 0x46d   :  { %2582 = vmatprep.subr.bf16.mxu0 %v3033_v35  ;;  %2608 = vmatprep.subr.bf16.mxu1 %v2910_v58 }
 0x470   :  { %2584 = vmatpush1.bf16.msra.mxu0 %v3040_v41  ;;  %2610 = vmatpush3.bf16.msra.mxu1 %v3098_v13 }
 0x471   :  { %2586 = vmatprep.subr.bf16.mxu0 %v3044_v42  ;;  %2611 = vmatprep.subr.bf16.mxu1 %v2910_v58 }
 0x474   :  { %2588 = vmatpush1.bf16.msra.mxu0 %v3051_v48  ;;  %2613 = vmatpush3.bf16.msra.mxu1 %v3102_v18 }
 0x475   :  { %2590 = vmatprep.subr.bf16.mxu0 %v3055_v49  ;;  %2614 = vmatprep.subr.bf16.mxu1 %v2910_v58 }
 0x478   :  { %2592 = vmatpush1.bf16.msra.mxu0 %v3062_v53  ;;  %2616 = vmatpush3.bf16.msra.mxu1 %v3106_v23 }
 0x479   :  { %2618 = vmatprep.subr.bf16.mxu0 %v2993_v5  ;;  %2649 = vmatprep.subr.bf16.mxu1 %v2910_v58 }
 0x52e   :  { %v1018_v47 = vpop.f32.mrb[6].mxu0  ;;  %v1103_v50 = vpop.f32.mrb[10].mxu1 }
 0x52f   :  { %v1023_v51 = vadd.f32 %v1018_v47, %v186_v45  ;;  %v1020_v52 = vpop.f32.mrb[7].mxu0  ;;  %v2131_v54 = vpop.f32.mrb[11].mxu1  ;;  %v1104_v17 = vadd.f32 %v3153_v63, %v1103_v50  ;;  %v149_v45 = vmul.f32 %v3133_v30, %v106_v38  ;;  %v150_v47 = vmul.f32 %v3142_v39, %v106_v38 }
 0x530   :  { %v1030_v62 = vadd.f32 %v1020_v52, %v187_v55 }
 0x531   :  { %v1788_v59 = vmul.f32 -1.442695, %v1023_v51  ;;  %v189_v50 = vadd.f32 %v3139_v36, %v149_v45 }
 0x532   :  { %v1789_v2 = vmul.f32 -1.442695, %v1030_v62  ;;  %v190_v62 = vadd.f32 %v3145_v46, %v150_v47 }
 0x533   :  { %2813 = vpow2.f32 %v1788_v59 }
 0x534   :  { %2815 = vpow2.f32 %v1789_v2 }
 0x53d   :  { %v2814_v6 = vpop.eup %2813 }
 0x53e   :  { %v1027_v7 = vadd.f32 1.0, %v2814_v6  ;;  %v2816_v11 = vpop.eup %2815 }
 0x53f   :  { %v1034_v14 = vadd.f32 1.0, %v2816_v11 }
 0x540   :  { %2817 = vrcp.f32 %v1027_v7 }
 0x541   :  { %2819 = vrcp.f32 %v1034_v14  ;;  %v151_v14 = vmul.f32 %v3148_v60, %v106_v38 }
 0x54a   :  { %v2818_v19 = vpop.eup %2817 }
 0x54b   :  { %v1107_v24 = vmul.f32 %v2818_v19, %v1104_v17  ;;  %v2820_v26 = vpop.eup %2819 }
 0x54c   :  { %v1110_v29 = vsub.f32 1.0, %v2820_v26  ;;  %v1112_v43 = vmul.f32 %v2820_v26, %v3314_v40 }
 0x54d   :  { %v1108_v25 = vadd.f32 %v1107_v24, %v188_v20  ;;  %v191_v24 = vadd.f32 %v3156_v3, %v151_v14 }
 0x54f   :  { %2821 = vtanh.f32 %v1108_v25 }
 0x559   :  { %v2822_v32 = vpop.eup %2821 }
 0x55a   :  { %v1111_v56 = vmul.f32 %v2822_v32, %v1110_v29 }
 0x55c   :  { %v3361_v44 = vadd.f32 %v1112_v43, %v1111_v56 }
 0x55e   :  { %1185 = vmatmul.mubr.f32.vlgmr.msra.gmra.mrb[8].mxu0 %v3361_v44  ;;  %2165 = vmatmul.mubr.f32.vlgmr.msra.gmra.mrb[12].mxu1 %v3361_v44 }
 0x55f   :  { %2620 = vmatpush1.bf16.msra.mxu0 %v2995_v9  ;;  %2651 = vmatpush3.bf16.msra.mxu1 %v3073_v57 }
 0x560   :  { %2622 = vmatprep.subr.bf16.mxu0 %v2997_v10  ;;  %2652 = vmatprep.subr.bf16.mxu1 %v2910_v58 }
 0x561   :  { %1352 = vmatprep.mubr.f32.mxu0 %v2908_v0  ;;  %2199 = vmatprep.mubr.msk.f32.mxu1 %vm2911_vm0, %v2908_v0 }
 0x563   :  { %2624 = vmatpush1.bf16.msra.mxu0 %v3002_v15  ;;  %2654 = vmatpush3.bf16.msra.mxu1 %v3080_v61 }
 0x564   :  { %2626 = vmatprep.subr.bf16.mxu0 %v3006_v16  ;;  %2655 = vmatprep.subr.bf16.mxu1 %v2910_v58 }
 0x567   :  { %2628 = vmatpush1.bf16.msra.mxu0 %v3010_v21  ;;  %2657 = vmatpush3.bf16.msra.mxu1 %v3086_v1 }
 0x568   :  { %2630 = vmatprep.subr.bf16.mxu0 %v3014_v22  ;;  %2658 = vmatprep.subr.bf16.mxu1 %v2910_v58 }
 0x56b   :  { %2632 = vmatpush1.bf16.msra.mxu0 %v3018_v27  ;;  %2660 = vmatpush3.bf16.msra.mxu1 %v3090_v4 }
 0x56c   :  { %2634 = vmatprep.subr.bf16.mxu0 %v3022_v28  ;;  %2661 = vmatprep.subr.bf16.mxu1 %v2910_v58 }
 0x56f   :  { %2636 = vmatpush1.bf16.msra.mxu0 %v3026_v33  ;;  %2663 = vmatpush3.bf16.msra.mxu1 %v3094_v8 }
 0x570   :  { %2638 = vmatprep.subr.bf16.mxu0 %v3033_v35  ;;  %2664 = vmatprep.subr.bf16.mxu1 %v2910_v58 }
 0x573   :  { %2640 = vmatpush1.bf16.msra.mxu0 %v3040_v41  ;;  %2666 = vmatpush3.bf16.msra.mxu1 %v3098_v13 }
 0x574   :  { %2642 = vmatprep.subr.bf16.mxu0 %v3044_v42  ;;  %2667 = vmatprep.subr.bf16.mxu1 %v2910_v58 }
 0x577   :  { %2644 = vmatpush1.bf16.msra.mxu0 %v3051_v48  ;;  %2669 = vmatpush3.bf16.msra.mxu1 %v3102_v18 }
 0x578   :  { %2646 = vmatprep.subr.bf16.mxu0 %v3055_v49  ;;  %2670 = vmatprep.subr.bf16.mxu1 %v2910_v58 }
 0x57b   :  { %2648 = vmatpush1.bf16.msra.mxu0 %v3062_v53  ;;  %2672 = vmatpush3.bf16.msra.mxu1 %v3106_v23 }
 0x57c   :  { %2674 = vmatprep.subr.bf16.mxu0 %v2993_v5  ;;  %2705 = vmatprep.subr.bf16.mxu1 %v2910_v58 }
 0x631   :  { %v1186_v51 = vpop.f32.mrb[8].mxu0  ;;  %v1271_v52 = vpop.f32.mrb[12].mxu1 }
 0x632   :  { %v1191_v54 = vadd.f32 %v1186_v51, %v189_v50  ;;  %v1188_v55 = vpop.f32.mrb[9].mxu0  ;;  %v2166_v59 = vpop.f32.mrb[13].mxu1  ;;  %v1272_v19 = vadd.f32 %v3153_v63, %v1271_v52 }
 0x633   :  { %v1198_v6 = vadd.f32 %v1188_v55, %v190_v62  ;;  %v1636_v55 = vld [vmem:[%s3559_s7 + $0x18] sm:$0xff] }
 0x634   :  { %v1790_v2 = vmul.f32 -1.442695, %v1191_v54  ;;  %v1635_v54 = vld [vmem:[%s3559_s7 + $0x10] sm:$0xff] }
 0x635   :  { %v1791_v5 = vmul.f32 -1.442695, %v1198_v6  ;;  %v1637_v6 = vld [vmem:[%s3559_s7 + $0x20] sm:$0xff] }
 0x636   :  { %2823 = vpow2.f32 %v1790_v2  ;;  %v2733_v2 = vpack.c.bf16 %v1636_v55, %v1635_v54 }
 0x637   :  { %2825 = vpow2.f32 %v1791_v5  ;;  %v1638_v5 = vld [vmem:[%s3559_s7 + $0x28] sm:$0xff] }
 0x640   :  { %v2824_v7 = vpop.eup %2823 }
 0x641   :  { %v1195_v11 = vadd.f32 1.0, %v2824_v7  ;;  %v2826_v12 = vpop.eup %2825  ;;  %v2737_v7 = vpack.c.bf16 %v1638_v5, %v1637_v6 }
 0x642   :  { %v1202_v17 = vadd.f32 1.0, %v2826_v12  ;;  %v1640_v12 = vld [vmem:[%s3559_s7 + $0x38] sm:$0xff] }
 0x643   :  { %2827 = vrcp.f32 %v1195_v11  ;;  %v1639_v11 = vld [vmem:[%s3559_s7 + $0x30] sm:$0xff] }
 0x644   :  { %2829 = vrcp.f32 %v1202_v17  ;;  %v2741_v14 = vpack.c.bf16 %v1640_v12, %v1639_v11  ;;  %v1641_v17 = vld [vmem:[%s3559_s7 + $0x40] sm:$0xff] }
 0x64d   :  { %v2828_v20 = vpop.eup %2827 }
 0x64e   :  { %v1275_v25 = vmul.f32 %v2828_v20, %v1272_v19  ;;  %v2830_v29 = vpop.eup %2829  ;;  %v1643_v20 = vld [vmem:[%s3559_s7 + $0x50] sm:$0xff] }
 0x64f   :  { %v1278_v32 = vsub.f32 1.0, %v2830_v29  ;;  %v1280_v45 = vmul.f32 %v2830_v29, %v3361_v44  ;;  %v1646_v29 = vld [vmem:[%s3559_s7 + $0x68] sm:$0xff] }
 0x650   :  { %v1276_v26 = vadd.f32 %v1275_v25, %v191_v24  ;;  %v1644_v24 = vld [vmem:[%s3559_s7 + $0x58] sm:$0xff] }
 0x651   :  { %v2749_v25 = vpack.c.bf16 %v1644_v24, %v1643_v20 }
 0x652   :  { %2831 = vtanh.f32 %v1276_v26  ;;  %v1645_v26 = vld [vmem:[%s3559_s7 + $0x60] sm:$0xff] }
 0x65c   :  { %v2832_v56 = vpop.eup %2831 }
 0x65d   :  { %v1279_v43 = vmul.f32 %v2832_v56, %v1278_v32  ;;  %v2753_v32 = vpack.c.bf16 %v1646_v29, %v1645_v26  ;;  %v1647_v56 = vld [vmem:[%s3559_s7 + $0x70] sm:$0xff] }
 0x65f   :  { %v3408_v47 = vadd.f32 %v1280_v45, %v1279_v43  ;;  %v1648_v43 = vld [vmem:[%s3559_s7 + $0x78] sm:$0xff] }
 0x660   :  { %v2757_v45 = vpack.c.bf16 %v1648_v43, %v1647_v56 }
 0x661   :  { %1353 = vmatmul.mubr.f32.vlgmr.msra.gmra.mrb[10].mxu0 %v3408_v47  ;;  %2200 = vmatmul.mubr.f32.vlgmr.msra.gmra.mrb[14].mxu1 %v3408_v47 }
 0x662   :  { %2676 = vmatpush1.bf16.msra.mxu0 %v2995_v9  ;;  %2707 = vmatpush3.bf16.msra.mxu1 %v3073_v57  ;;  %v1634_v9 = vld [vmem:[%s3559_s7 + $0x8] sm:$0xff] }
 0x663   :  { %2678 = vmatprep.subr.bf16.mxu0 %v2997_v10  ;;  %2708 = vmatprep.subr.bf16.mxu1 %v2910_v58 }
 0x664   :  { %1520 = vmatprep.mubr.f32.mxu0 %v2908_v0  ;;  %2234 = vmatprep.mubr.msk.f32.mxu1 %vm2911_vm0, %v2908_v0  ;;  %v1633_v0 = vld [vmem:[%s3559_s7] sm:$0xff] }
 0x665   :  { %v2729_v10 = vpack.c.bf16 %v1634_v9, %v1633_v0  ;;  %v116_v0 = vpop.permute.xlu1 %115 }
 0x666   :  { %2680 = vmatpush1.bf16.msra.mxu0 %v3002_v15  ;;  %2710 = vmatpush3.bf16.msra.mxu1 %v3080_v61  ;;  %v111_v15 = vpop.permute.xlu0 %110  ;;  %v155_v9 = vmul.f32 %v3133_v30, %v116_v0 }
 0x667   :  { %2682 = vmatprep.subr.bf16.mxu0 %v3006_v16  ;;  %2711 = vmatprep.subr.bf16.mxu1 %v2910_v58  ;;  %v152_v16 = vmul.f32 %v3133_v30, %v111_v15 }
 0x66a   :  { %2684 = vmatpush1.bf16.msra.mxu0 %v3010_v21  ;;  %2713 = vmatpush3.bf16.msra.mxu1 %v3086_v1  ;;  %v153_v21 = vmul.f32 %v3142_v39, %v111_v15  ;;  %v154_v1 = vmul.f32 %v3148_v60, %v111_v15  ;;  %v195_v15 = vadd.f32 %v3139_v36, %v155_v9 }
 0x66b   :  { %2686 = vmatprep.subr.bf16.mxu0 %v3014_v22  ;;  %2714 = vmatprep.subr.bf16.mxu1 %v2910_v58  ;;  %v192_v22 = vadd.f32 %v3139_v36, %v152_v16  ;;  %v2853_v36 = vld [vmem:[%s3558_s6] ss:$0 sm:$0xff] }
 0x66e   :  { %2688 = vmatpush1.bf16.msra.mxu0 %v3018_v27  ;;  %2716 = vmatpush3.bf16.msra.mxu1 %v3090_v4 }
 0x66f   :  { %2690 = vmatprep.subr.bf16.mxu0 %v3022_v28  ;;  %2717 = vmatprep.subr.bf16.mxu1 %v2910_v58 }
 0x672   :  { %2692 = vmatpush1.bf16.msra.mxu0 %v3026_v33  ;;  %2719 = vmatpush3.bf16.msra.mxu1 %v3094_v8 }
 0x673   :  { %2694 = vmatprep.subr.bf16.mxu0 %v3033_v35  ;;  %2720 = vmatprep.subr.bf16.mxu1 %v2910_v58 }
 0x676   :  { %2696 = vmatpush1.bf16.msra.mxu0 %v3040_v41  ;;  %2722 = vmatpush3.bf16.msra.mxu1 %v3098_v13 }
 0x677   :  { %2698 = vmatprep.subr.bf16.mxu0 %v3044_v42  ;;  %2723 = vmatprep.subr.bf16.mxu1 %v2910_v58  ;;  %v193_v42 = vadd.f32 %v3145_v46, %v153_v21 }
 0x67a   :  { %2700 = vmatpush1.bf16.msra.mxu0 %v3051_v48  ;;  %2725 = vmatpush3.bf16.msra.mxu1 %v3102_v18  ;;  %v194_v18 = vadd.f32 %v3156_v3, %v154_v1 }
 0x67b   :  { %2702 = vmatprep.subr.bf16.mxu0 %v3055_v49  ;;  %2726 = vmatprep.subr.bf16.mxu1 %v2910_v58 }
 0x67e   :  { %2704 = vmatpush1.bf16.msra.mxu0 %v3062_v53  ;;  %2728 = vmatpush3.bf16.msra.mxu1 %v3106_v23 }
 0x67f   :  { %2730 = vmatprep.subr.bf16.mxu0 %v2729_v10 }
 0x734   :  { %v1354_v27 = vpop.f32.mrb[10].mxu0  ;;  %v1439_v28 = vpop.f32.mrb[14].mxu1 }
 0x735   :  { %v1359_v33 = vadd.f32 %v1354_v27, %v192_v22  ;;  %v1356_v35 = vpop.f32.mrb[11].mxu0  ;;  %v2201_v41 = vpop.f32.mrb[15].mxu1  ;;  %v1440_v8 = vadd.f32 %v3153_v63, %v1439_v28 }
 0x736   :  { %v1366_v49 = vadd.f32 %v1356_v35, %v193_v42 }
 0x737   :  { %v1792_v48 = vmul.f32 -1.442695, %v1359_v33 }
 0x738   :  { %v1793_v53 = vmul.f32 -1.442695, %v1366_v49  ;;  %v1796_v49 = vld [vmem:[%s3560_s8] ss:$0 sm:$0xff] }
 0x739   :  { %2833 = vpow2.f32 %v1792_v48 }
 0x73a   :  { %2835 = vpow2.f32 %v1793_v53 }
 0x743   :  { %v2834_v57 = vpop.eup %2833 }
 0x744   :  { %v1363_v58 = vadd.f32 1.0, %v2834_v57  ;;  %v2836_v61 = vpop.eup %2835 }
 0x745   :  { %v1370_v4 = vadd.f32 1.0, %v2836_v61 }
 0x746   :  { %2837 = vrcp.f32 %v1363_v58 }
 0x747   :  { %2839 = vrcp.f32 %v1370_v4 }
 0x750   :  { %v2838_v13 = vpop.eup %2837 }
 0x751   :  { %v1443_v23 = vmul.f32 %v2838_v13, %v1440_v8  ;;  %v2840_v50 = vpop.eup %2839 }
 0x752   :  { %v1446_v51 = vsub.f32 1.0, %v2840_v50  ;;  %v1448_v63 = vmul.f32 %v2840_v50, %v3408_v47 }
 0x753   :  { %v1444_v38 = vadd.f32 %v1443_v23, %v194_v18 }
 0x755   :  { %2841 = vtanh.f32 %v1444_v38 }
 0x75f   :  { %v2842_v52 = vpop.eup %2841 }
 0x760   :  { %v1447_v59 = vmul.f32 %v2842_v52, %v1446_v51 }
 0x762   :  { %v3465_v62 = vadd.f32 %v1448_v63, %v1447_v59 }
 0x764   :  { %1521 = vmatmul.mubr.f32.vlgmr.msra.gmra.mrb[12].mxu0 %v3465_v62  ;;  %2235 = vmatmul.mubr.f32.vlgmr.msra.gmra.mrb[16].mxu1 %v3465_v62 }
 0x765   :  { %2732 = vmatpush3.bf16.msra.mxu0 %v2729_v10  ;;  %2269 = vmatprep.mubr.f32.mxu0 %v3161_v31  ;;  %v1642_v31 = vld [vmem:[%s3559_s7 + $0x48] sm:$0xff]  ;;  %v156_v10 = vmul.f32 %v3142_v39, %v116_v0  ;;  %v157_v39 = vmul.f32 %v3148_v60, %v116_v0 }
 0x766   :  { %2734 = vmatprep.subr.bf16.mxu0 %v2733_v2  ;;  %v2745_v19 = vpack.c.bf16 %v1642_v31, %v1641_v17 }
 0x769   :  { %2736 = vmatpush3.bf16.msra.mxu0 %v2733_v2 }
 0x76a   :  { %2738 = vmatprep.subr.bf16.mxu0 %v2737_v7 }
 0x76d   :  { %2740 = vmatpush3.bf16.msra.mxu0 %v2737_v7 }
 0x76e   :  { %2742 = vmatprep.subr.bf16.mxu0 %v2741_v14 }
 0x771   :  { %2744 = vmatpush3.bf16.msra.mxu0 %v2741_v14 }
 0x772   :  { %2746 = vmatprep.subr.bf16.mxu0 %v2745_v19 }
 0x775   :  { %2748 = vmatpush3.bf16.msra.mxu0 %v2745_v19 }
 0x776   :  { %2750 = vmatprep.subr.bf16.mxu0 %v2749_v25 }
 0x779   :  { %2752 = vmatpush3.bf16.msra.mxu0 %v2749_v25 }
 0x77a   :  { %2754 = vmatprep.subr.bf16.mxu0 %v2753_v32 }
 0x77d   :  { %2756 = vmatpush3.bf16.msra.mxu0 %v2753_v32 }
 0x77e   :  { %2758 = vmatprep.subr.bf16.mxu0 %v2757_v45 }
 0x781   :  { %2760 = vmatpush3.bf16.msra.mxu0 %v2757_v45 }
 0x784   :  { %2270 = vmatmul.mubr.f32.vlgmr.msra.gmra.mrb[14].mxu0 %v3220_v37 }
 0x785   :  { %2272 = vmatprep.mubr.f32.mxu0 %v3267_v34 }
 0x788   :  { %2273 = vmatmul.mubr.f32.gmra.mrb[16].mxu0 %v3314_v40  ;;  %v196_v40 = vadd.f32 %v3145_v46, %v156_v10  ;;  %v197_v46 = vadd.f32 %v3156_v3, %v157_v39 }
 0x789   :  { %2275 = vmatprep.mubr.f32.mxu0 %v3361_v44 }
 0x78c   :  { %2276 = vmatmul.mubr.f32.gmra.mrb[18].mxu0 %v3408_v47 }
 0x78d   :  { %2278 = vmatprep.mubr.f32.mxu0 %v3465_v62 }
 0x837   :  { %v1522_v16 = vpop.f32.mrb[12].mxu0  ;;  %v1607_v21 = vpop.f32.mrb[16].mxu1 }
 0x838   :  { %v1527_v37 = vadd.f32 %v1522_v16, %v195_v15  ;;  %v1524_v22 = vpop.f32.mrb[13].mxu0  ;;  %v2236_v34 = vpop.f32.mrb[17].mxu1  ;;  %v1608_v41 = vadd.f32 %v2853_v36, %v1607_v21 }
 0x839   :  { %v1534_v44 = vadd.f32 %v1524_v22, %v196_v40 }
 0x83a   :  { %v1794_v27 = vmul.f32 -1.442695, %v1527_v37 }
 0x83b   :  { %v1795_v47 = vmul.f32 -1.442695, %v1534_v44 }
 0x83c   :  { %2843 = vpow2.f32 %v1794_v27 }
 0x83d   :  { %2845 = vpow2.f32 %v1795_v47 }
 0x846   :  { %v2844_v28 = vpop.eup %2843 }
 0x847   :  { %v1531_v33 = vadd.f32 1.0, %v2844_v28  ;;  %v2846_v30 = vpop.eup %2845 }
 0x848   :  { %v1538_v35 = vadd.f32 1.0, %v2846_v30 }
 0x849   :  { %2847 = vrcp.f32 %v1531_v33 }
 0x84a   :  { %2849 = vrcp.f32 %v1538_v35 }
 0x853   :  { %v2848_v42 = vpop.eup %2847 }
 0x854   :  { %v1611_v48 = vmul.f32 %v2848_v42, %v1608_v41  ;;  %v2850_v13 = vpop.eup %2849 }
 0x855   :  { %v1614_v51 = vsub.f32 1.0, %v2850_v13  ;;  %v1616_v55 = vmul.f32 %v2850_v13, %v3465_v62 }
 0x856   :  { %v1612_v53 = vadd.f32 %v1611_v48, %v197_v46 }
 0x857   :  { %v2271_v57 = vpop.f32.mrb[14].mxu0 }
 0x858   :  { %2851 = vtanh.f32 %v1612_v53  ;;  %v1728_v58 = vadd.f32 %v2271_v57, %v1796_v49  ;;  %v1722_v60 = vpop.f32.mrb[15].mxu0 }
 0x859   :  { %v1723_v61 = vadd.f32 %v1796_v49, %v1722_v60 }
 0x85a   :  { %1762 = vst [vmem:[%s3561_s9 + $0x8] sm:$0xff] %v1728_v58 }
 0x85b   :  { %1761 = vst [vmem:[%s3561_s9] sm:$0xff] %v1723_v61  ;;  %v2274_v3 = vpop.f32.mrb[16].mxu0 }
 0x85c   :  { %v1738_v1 = vadd.f32 %v2274_v3, %v1796_v49  ;;  %v1732_v4 = vpop.f32.mrb[17].mxu0 }
 0x85d   :  { %v1733_v8 = vadd.f32 %v1796_v49, %v1732_v4 }
 0x85e   :  { %1764 = vst [vmem:[%s3561_s9 + $0x18] sm:$0xff] %v1738_v1 }
 0x85f   :  { %1763 = vst [vmem:[%s3561_s9 + $0x10] sm:$0xff] %v1733_v8  ;;  %v2277_v18 = vpop.f32.mrb[18].mxu0 }
 0x860   :  { %v1748_v23 = vadd.f32 %v2277_v18, %v1796_v49  ;;  %v1742_v38 = vpop.f32.mrb[19].mxu0 }
 0x861   :  { %v1743_v50 = vadd.f32 %v1796_v49, %v1742_v38 }
 0x862   :  { %v2852_v52 = vpop.eup %2851  ;;  %1766 = vst [vmem:[%s3561_s9 + $0x28] sm:$0xff] %v1748_v23 }
 0x863   :  { %1765 = vst [vmem:[%s3561_s9 + $0x20] sm:$0xff] %v1743_v50  ;;  %v1615_v54 = vmul.f32 %v2852_v52, %v1614_v51 }
 0x865   :  { %v1617_v59 = vadd.f32 %v1616_v55, %v1615_v54 }
 0x867   :  { %1624 = vst [vmem:[%s3562_s10] sm:$0xff] %v1617_v59  ;;  %2279 = vmatmul.mubr.f32.gmra.mrb[20].mxu0 %v1617_v59 }
 0x93a   :  { %v2280_v63 = vpop.f32.mrb[20].mxu0 }
 0x93b   :  { %v1758_v2 = vadd.f32 %v2280_v63, %v1796_v49  ;;  %v1752_v6 = vpop.f32.mrb[21].mxu0 }
 0x93c   :  { %v1753_v5 = vadd.f32 %v1796_v49, %v1752_v6 }
 0x93d   :  { %1768 = vst [vmem:[%s3561_s9 + $0x38] sm:$0xff] %v1758_v2 }
 0x93e   :  { %1767 = vst [vmem:[%s3561_s9 + $0x30] sm:$0xff] %v1753_v5 }
 0x93f   :  { %1777 = vsyncpa [#allocation6], 1 }
 0x940   :  { %1778 = vsyncpa [#allocation8], 1 }

</bundles_post_ra>
